<compile_context>
chip_gen: v7x
topology: tpu7x:2x2x1
jax: 0.10.0
libtpu: 0.0.40
codegen_flags: <defaults>
</compile_context>

<pallas_src>
import jax
import jax.numpy as jnp
from jax.experimental import pallas as pl
from jax.experimental.pallas import tpu as pltpu


# -----------------------------------------------------------------------------
# Problem sizes (synthetic, small — consistent with the wrapper's control flow)
# -----------------------------------------------------------------------------
B = 2          # batch
K = 3          # number of trajectory samples from stage 1 (path_net)
T = 8          # trajectory / motion sequence length
DC = 32        # conditioning feature dim (stand-in for text/scene encoding)
DT = 8         # trajectory feature dim per timestep
DM = 16        # motion feature dim per timestep
S = 2          # motion samples per trajectory; wrapper keeps [:, :, 0] only
H = 64         # hidden width of both MLP heads
P = K * T      # number of stage-2 (k, t) positions


# -----------------------------------------------------------------------------
# Fused two-stage Pallas kernel: 4 lane-dense matmuls, 1 unmasked store.
# -----------------------------------------------------------------------------
def fused_two_stage_kernel(cond_ref, pw1_ref, pb1_ref, wf_ref, wc_ref, bf_ref,
                           w2_ref, b2_ref, o_ref):
    cond = cond_ref[...]                                               # [B, DC]

    # stage 1 hidden (path_net layer 1)
    h1 = jnp.dot(cond, pw1_ref[...], preferred_element_type=jnp.float32)
    h1 = jnp.maximum(h1 + pb1_ref[...], 0.0)                           # [B, H]

    # stage-1 layer-2  fused with  stage-2 layer-1 for ALL K*T positions:
    #   pre[:, p*H:(p+1)*H] = traj_p @ m_w1_traj + cond @ m_w1_cond + biases
    pre = (jnp.dot(h1, wf_ref[...], preferred_element_type=jnp.float32)
           + jnp.dot(cond, wc_ref[...], preferred_element_type=jnp.float32)
           + bf_ref[...])                                              # [B, P*H]
    h2 = jnp.maximum(pre, 0.0)

    # stage-2 layer-2 for all positions via block-diagonal W2; single
    # lane-dense [B, P*DM] store (384 = 3*128 lanes, unmasked vst).
    o_ref[...] = (jnp.dot(h2, w2_ref[...], preferred_element_type=jnp.float32)
                  + b2_ref[...])


# -----------------------------------------------------------------------------
# Parameters
# -----------------------------------------------------------------------------
def init_params(key):
    ks = jax.random.split(key, 8)
    scale = 0.05
    return {
        # path_net: cond [B, DC] -> K*T*DT trajectory values
        "p_w1": scale * jax.random.normal(ks[0], (DC, H), jnp.float32),
        "p_b1": scale * jax.random.normal(ks[1], (1, H), jnp.float32),
        "p_w2": scale * jax.random.normal(ks[2], (H, K * T * DT), jnp.float32),
        "p_b2": scale * jax.random.normal(ks[3], (1, K * T * DT), jnp.float32),
        # motion_net: per-timestep [traj(DT) ++ cond(DC)] -> S*DM motion values
        "m_w1": scale * jax.random.normal(ks[4], (DT + DC, H), jnp.float32),
        "m_b1": scale * jax.random.normal(ks[5], (1, H), jnp.float32),
        "m_w2": scale * jax.random.normal(ks[6], (H, S * DM), jnp.float32),
        "m_b2": scale * jax.random.normal(ks[7], (1, S * DM), jnp.float32),
    }


def prepare_inference_params(params):
    """One-time host-side weight repack for the fused kernel.

    * W_fused  : per-position pre-contraction  p_w2[:, p-block] @ m_w1[:DT]
                 stacked along lanes                             -> [H,  P*H]
    * b_fused  : p_b2[:, p-block] @ m_w1[:DT] + m_b1 per position -> [1, P*H]
    * W_cond   : m_w1[DT:] (cond rows) tiled along lanes          -> [DC, P*H]
    * W2_big   : block-diag of m_w2[:, :DM] (wrapper keeps sample 0
                 only, so the other S-1 samples' columns are dead) -> [P*H, P*DM]
    * b2_big   : m_b2[:, :DM] tiled along lanes                    -> [1, P*DM]
    """
    hp = jax.lax.Precision.HIGHEST
    m_w1_traj = params["m_w1"][:DT, :]                     # [DT, H]
    m_w1_cond = params["m_w1"][DT:, :]                     # [DC, H]
    m_w2_s0 = params["m_w2"][:, :DM]                       # [H, DM]   (sample 0)
    m_b2_s0 = params["m_b2"][:, :DM]                       # [1, DM]

    w_fused = jnp.einsum("hpd,de->hpe",
                         params["p_w2"].reshape(H, P, DT), m_w1_traj,
                         precision=hp).reshape(H, P * H)
    b_fused = (jnp.einsum("pd,de->pe",
                          params["p_b2"].reshape(P, DT), m_w1_traj,
                          precision=hp).reshape(1, P * H)
               + jnp.tile(params["m_b1"], (1, P)))
    w_cond_big = jnp.tile(m_w1_cond, (1, P))               # [DC, P*H]
    w2_big = jnp.kron(jnp.eye(P, dtype=jnp.float32), m_w2_s0)   # [P*H, P*DM]
    b2_big = jnp.tile(m_b2_s0, (1, P))                     # [1, P*DM]

    return (params["p_w1"], params["p_b1"],
            w_fused, w_cond_big, b_fused, w2_big, b2_big)


# -----------------------------------------------------------------------------
# Forward (single fused pallas_call) and pure-JAX reference
# -----------------------------------------------------------------------------
@jax.jit
def two_stage_forward(prep, cond):
    """Mirrors TwoStageWrapper.forward(inference=True) as ONE kernel launch."""
    out = pl.pallas_call(
        fused_two_stage_kernel,
        out_shape=jax.ShapeDtypeStruct((B, P * DM), jnp.float32),
        in_specs=[pl.BlockSpec(memory_space=pltpu.MemorySpace.VMEM)] * 8,
        out_specs=pl.BlockSpec(memory_space=pltpu.MemorySpace.VMEM),
    )(cond, *prep)
    # batch['ksamples'] = stack_k(...)[:, :, 0]  ->  [B, K, T, DM] (free reshape)
    return out.reshape(B, K, T, DM)


def reference_forward(params, cond):
    """Pure-JAX reference mirroring the original per-stage / per-k control flow."""
    hp = jax.lax.Precision.HIGHEST

    def mlp(x, w1, b1, w2, b2):
        h = jnp.maximum(jnp.dot(x, w1, precision=hp) + b1, 0.0)
        return jnp.dot(h, w2, precision=hp) + b2

    traj = mlp(cond, params["p_w1"], params["p_b1"],
               params["p_w2"], params["p_b2"]).reshape(B, K, T, DT)
    outs = []
    for k in range(K):
        traj_k = traj[:, k]                                            # [B, T, DT]
        cond_rep = jnp.broadcast_to(cond[:, None, :], (B, T, DC))
        x = jnp.concatenate([traj_k, cond_rep], axis=-1).reshape(B * T, DT + DC)
        y = mlp(x, params["m_w1"], params["m_b1"],
                params["m_w2"], params["m_b2"]).reshape(B, T, S, DM)
        outs.append(jnp.transpose(y, (0, 2, 1, 3)))                    # [B, S, T, DM]
    return jnp.stack(outs, axis=1)[:, :, 0]                            # [B, K, T, DM]


if __name__ == "__main__":
    key = jax.random.PRNGKey(0)
    pkey, xkey = jax.random.split(key)
    params = init_params(pkey)
    prep = prepare_inference_params(params)
    cond = jax.random.normal(xkey, (B, DC), jnp.float32)   # synthetic condition feats

    out = two_stage_forward(prep, cond)
    out = jax.block_until_ready(out)

    ref = reference_forward(params, cond)
    assert out.shape == (B, K, T, DM), out.shape
    assert bool(jnp.all(jnp.isfinite(out)))
    assert jnp.allclose(out, ref, rtol=2e-2, atol=2e-3), \
        float(jnp.max(jnp.abs(out - ref)))
    print("KERNEL_OK")
</pallas_src>

<mosaic_0001>
module attributes {stable_mosaic.version = 11 : i64} {
  func.func @fused_two_stage_kernel(%arg0: memref<2x32xf32, #tpu.memory_space<vmem>>, %arg1: memref<32x64xf32, #tpu.memory_space<vmem>>, %arg2: memref<1x64xf32, #tpu.memory_space<vmem>>, %arg3: memref<64x1536xf32, #tpu.memory_space<vmem>>, %arg4: memref<32x1536xf32, #tpu.memory_space<vmem>>, %arg5: memref<1x1536xf32, #tpu.memory_space<vmem>>, %arg6: memref<1536x384xf32, #tpu.memory_space<vmem>>, %arg7: memref<1x384xf32, #tpu.memory_space<vmem>>, %arg8: memref<2x384xf32, #tpu.memory_space<vmem>>) attributes {dimension_semantics = [], scalar_prefetch = 0 : i64, scratch_operands = 0 : i64, tpu.core_type = #tpu.core_type<tc>} {
    %c0 = arith.constant 0 : index
    %c0_0 = arith.constant 0 : index
    %0 = vector.load %arg0[%c0, %c0_0] : memref<2x32xf32, #tpu.memory_space<vmem>>, vector<2x32xf32>
    %c0_1 = arith.constant 0 : index
    %c0_2 = arith.constant 0 : index
    %1 = vector.load %arg1[%c0_1, %c0_2] : memref<32x64xf32, #tpu.memory_space<vmem>>, vector<32x64xf32>
    %cst = arith.constant dense<0.000000e+00> : vector<2x64xf32>
    %2 = tpu.matmul %0, %1, %cst {dimension_numbers = #tpu.dot_dimension_numbers<[1], [0], [0], [1], [0, 0, 1, 1], [], []>} : vector<2x32xf32>, vector<32x64xf32>, vector<2x64xf32> -> vector<2x64xf32>
    %c0_3 = arith.constant 0 : index
    %c0_4 = arith.constant 0 : index
    %3 = vector.load %arg2[%c0_3, %c0_4] : memref<1x64xf32, #tpu.memory_space<vmem>>, vector<1x64xf32>
    %4 = vector.broadcast %3 : vector<1x64xf32> to vector<2x64xf32>
    %5 = arith.addf %2, %4 : vector<2x64xf32>
    %cst_5 = arith.constant 0.000000e+00 : f32
    %6 = vector.broadcast %cst_5 : f32 to vector<2x64xf32>
    %7 = arith.maximumf %5, %6 : vector<2x64xf32>
    %c0_6 = arith.constant 0 : index
    %c0_7 = arith.constant 0 : index
    %8 = vector.load %arg3[%c0_6, %c0_7] : memref<64x1536xf32, #tpu.memory_space<vmem>>, vector<64x1536xf32>
    %cst_8 = arith.constant dense<0.000000e+00> : vector<2x1536xf32>
    %9 = tpu.matmul %7, %8, %cst_8 {dimension_numbers = #tpu.dot_dimension_numbers<[1], [0], [0], [1], [0, 0, 1, 1], [], []>} : vector<2x64xf32>, vector<64x1536xf32>, vector<2x1536xf32> -> vector<2x1536xf32>
    %c0_9 = arith.constant 0 : index
    %c0_10 = arith.constant 0 : index
    %10 = vector.load %arg4[%c0_9, %c0_10] : memref<32x1536xf32, #tpu.memory_space<vmem>>, vector<32x1536xf32>
    %cst_11 = arith.constant dense<0.000000e+00> : vector<2x1536xf32>
    %11 = tpu.matmul %0, %10, %cst_11 {dimension_numbers = #tpu.dot_dimension_numbers<[1], [0], [0], [1], [0, 0, 1, 1], [], []>} : vector<2x32xf32>, vector<32x1536xf32>, vector<2x1536xf32> -> vector<2x1536xf32>
    %12 = arith.addf %9, %11 : vector<2x1536xf32>
    %c0_12 = arith.constant 0 : index
    %c0_13 = arith.constant 0 : index
    %13 = vector.load %arg5[%c0_12, %c0_13] : memref<1x1536xf32, #tpu.memory_space<vmem>>, vector<1x1536xf32>
    %14 = vector.broadcast %13 : vector<1x1536xf32> to vector<2x1536xf32>
    %15 = arith.addf %12, %14 : vector<2x1536xf32>
    %cst_14 = arith.constant 0.000000e+00 : f32
    %16 = vector.broadcast %cst_14 : f32 to vector<2x1536xf32>
    %17 = arith.maximumf %15, %16 : vector<2x1536xf32>
    %c0_15 = arith.constant 0 : index
    %c0_16 = arith.constant 0 : index
    %18 = vector.load %arg6[%c0_15, %c0_16] : memref<1536x384xf32, #tpu.memory_space<vmem>>, vector<1536x384xf32>
    %cst_17 = arith.constant dense<0.000000e+00> : vector<2x384xf32>
    %19 = tpu.matmul %17, %18, %cst_17 {dimension_numbers = #tpu.dot_dimension_numbers<[1], [0], [0], [1], [0, 0, 1, 1], [], []>} : vector<2x1536xf32>, vector<1536x384xf32>, vector<2x384xf32> -> vector<2x384xf32>
    %c0_18 = arith.constant 0 : index
    %c0_19 = arith.constant 0 : index
    %20 = vector.load %arg7[%c0_18, %c0_19] : memref<1x384xf32, #tpu.memory_space<vmem>>, vector<1x384xf32>
    %21 = vector.broadcast %20 : vector<1x384xf32> to vector<2x384xf32>
    %22 = arith.addf %19, %21 : vector<2x384xf32>
    %c0_20 = arith.constant 0 : index
    %c0_21 = arith.constant 0 : index
    %23 = vector.load %arg8[%c0_20, %c0_21] : memref<2x384xf32, #tpu.memory_space<vmem>>, vector<2x384xf32>
    tpu.vector_store %arg8[%c0_20, %c0_21], %22 {strides = array<i32>} : memref<2x384xf32, #tpu.memory_space<vmem>>, vector<2x384xf32>,
    return
  }
}

</mosaic_0001>

<bundles_post_ra>
// kernel: two_stage_forward.1
= control target key start
LH: loop header
LB: loop body
LE: loop exit
PB: predicated region body
PF: predicated region fallthrough
CT: control target
= control target key end

     0   :  { %13 = vsyncpa [#allocation3], 0  ;;  %s4324_s0 = inlined_call_operand.hbm [shape: f32[2,32], index: 0, kind: input, shape index: {}]   ;;  %s4325_s1 = inlined_call_operand.hbm [shape: f32[32,64], index: 1, kind: input, shape index: {}]   ;;  %s4326_s2 = inlined_call_operand.hbm [shape: f32[1,64], index: 2, kind: input, shape index: {}]   ;;  %s4327_s3 = inlined_call_operand.hbm [shape: f32[64,1536], index: 3, kind: input, shape index: {}]   ;;  %s4328_s4 = inlined_call_operand.hbm [shape: f32[32,1536], index: 4, kind: input, shape index: {}]   ;;  %s4329_s5 = inlined_call_operand.hbm [shape: f32[1,1536], index: 5, kind: input, shape index: {}]   ;;  %s4330_s6 = inlined_call_operand.hbm [shape: f32[1536,384], index: 6, kind: input, shape index: {}]   ;;  %s4331_s7 = inlined_call_operand.hbm [shape: f32[1,384], index: 7, kind: input, shape index: {}]   ;;  %s4332_s8 = inlined_call_operand.vmem [shape: f32[2,384], index: 8, kind: output, shape index: {}]  }
   0x1   :  { %14 = vsyncpa [#allocation5], 0 }
   0x2   :  { %15 = vsyncpa [#allocation8], 0 }
   0x3   :  { %16 = vsyncpa [#allocation11], 0 }
   0x4   :  { %17 = vsyncpa [#allocation14], 0  ;;  %s3969_s27 = smov [#allocation4]   ;;  %s3783_s9 = scalar_lea.hbm %s4325_s1, 512 }
   0x5   :  { %s33_s28 = sshll.u32 %s3969_s27, 4  ;;  %p3784_p0 = scmp.ne.s32.totalorder %s4325_s1, %s3783_s9  ;;  %s34_s28 = int_to_ptr.vmem [resolvable:$true] %s33_s28 }
   0x6   :  { %p3787_p1 = scmp.lt.u32.totalorder %s3783_s9, %s4325_s1 }
   0x8   :  { %p3789_p2 = pnand %p3787_p1, %p3784_p0 }
   0xa   :  { %3792 = shalt.err (!%p3789_p2)
}
   0xb   :  { %s3793_s14 = scalar_lea.vmem %s34_s28, 512  ;;  %p3798_p4 = scmp.lt.s32.totalorder %s34_s28, %s34_s28 }
   0xc   :  { %p3794_p3 = scmp.ne.s32.totalorder %s34_s28, %s3793_s14  ;;  %p3799_p5 = scmp.lt.s32.totalorder %s3793_s14, %s3793_s14 }
   0xe   :  { %p3800_p6 = por %p3799_p5, %p3798_p4 }
  0x10   :  { %p3801_p7 = pnand %p3800_p6, %p3794_p3 }
  0x12   :  { %3804 = shalt.err (!%p3801_p7)
}
  0x13   :  { %s3970_s15 = smov 128   ;;  %s3971_s16 = smov 8  }
  0x14   :  { %39 = dma.hbm_to_vmem [thread:$0]  %s4325_s1, 512, %s34_s28, [#allocation5], %s3970_s15, %s3970_s15, %s3971_s16  }
  0x15   :  { %s3972_s19 = smov [#allocation7]   ;;  %s3805_s23 = scalar_lea.hbm %s4327_s3, 12288 }
  0x16   :  { %s55_s20 = sshll.u32 %s3972_s19, 4  ;;  %p3806_p8 = scmp.ne.s32.totalorder %s4327_s3, %s3805_s23  ;;  %s56_s20 = int_to_ptr.vmem [resolvable:$true] %s55_s20 }
  0x17   :  { %p3809_p9 = scmp.lt.u32.totalorder %s3805_s23, %s4327_s3 }
  0x19   :  { %p3811_p10 = pnand %p3809_p9, %p3806_p8 }
  0x1b   :  { %3814 = shalt.err (!%p3811_p10)
}
  0x1c   :  { %s3815_s29 = scalar_lea.vmem %s56_s20, 12288  ;;  %p3820_p12 = scmp.lt.s32.totalorder %s56_s20, %s56_s20 }
  0x1d   :  { %p3816_p11 = scmp.ne.s32.totalorder %s56_s20, %s3815_s29  ;;  %p3821_p13 = scmp.lt.s32.totalorder %s3815_s29, %s3815_s29 }
  0x1f   :  { %p3822_p0 = por %p3821_p13, %p3820_p12 }
  0x21   :  { %p3823_p1 = pnand %p3822_p0, %p3816_p11 }
  0x23   :  { %3826 = shalt.err (!%p3823_p1)
}
  0x24   :  { %s3973_s1 = smov 1536   ;;  %s3974_s28 = smov 96  }
  0x25   :  { %61 = dma.hbm_to_vmem [thread:$0]  %s4327_s3, 12288, %s56_s20, [#allocation8], %s3973_s1, %s3973_s1, %s3974_s28  }
  0x26   :  { %s3975_s10 = smov [#allocation10]   ;;  %s3976_s12 = smov [#allocation2]  }
  0x27   :  { %s80_s11 = sshll.u32 %s3975_s10, 4  ;;  %s24_s13 = sshll.u32 %s3976_s12, 4  ;;  %s81_s11 = int_to_ptr.vmem [resolvable:$true] %s80_s11  ;;  %s25_s13 = int_to_ptr.vmem [resolvable:$true] %s24_s13 }
  0x28   :  { %s3827_s16 = scalar_lea.hbm %s4329_s5, 192 }
  0x29   :  { %p3828_p2 = scmp.ne.s32.totalorder %s4329_s5, %s3827_s16  ;;  %p3831_p3 = scmp.lt.u32.totalorder %s3827_s16, %s4329_s5 }
  0x2b   :  { %p3833_p4 = pnand %p3831_p3, %p3828_p2 }
  0x2d   :  { %3836 = shalt.err (!%p3833_p4)
}
  0x2e   :  { %s3837_s3 = scalar_lea.vmem %s81_s11, 192  ;;  %p3842_p6 = scmp.lt.s32.totalorder %s81_s11, %s81_s11 }
  0x2f   :  { %p3838_p5 = scmp.ne.s32.totalorder %s81_s11, %s3837_s3  ;;  %p3843_p7 = scmp.lt.s32.totalorder %s3837_s3, %s3837_s3 }
  0x31   :  { %p3844_p8 = por %p3843_p7, %p3842_p6 }
  0x33   :  { %p3845_p9 = pnand %p3844_p8, %p3838_p5 }
  0x35   :  { %3848 = shalt.err (!%p3845_p9)
}
  0x36   :  { %83 = dma.hbm_to_vmem [thread:$0]  %s4329_s5, 192, %s81_s11, [#allocation11]  }
  0x37   :  { %s3849_s25 = scalar_lea.hbm %s4324_s0, 32 }
  0x38   :  { %p3850_p10 = scmp.ne.s32.totalorder %s4324_s0, %s3849_s25  ;;  %p3853_p11 = scmp.lt.u32.totalorder %s3849_s25, %s4324_s0 }
  0x3a   :  { %p3855_p12 = pnand %p3853_p11, %p3850_p10 }
  0x3c   :  { %3858 = shalt.err (!%p3855_p12)
}
  0x3d   :  { %s3859_s9 = scalar_lea.vmem %s25_s13, 32  ;;  %p3864_p0 = scmp.lt.s32.totalorder %s25_s13, %s25_s13 }
  0x3e   :  { %p3860_p13 = scmp.ne.s32.totalorder %s25_s13, %s3859_s9  ;;  %p3865_p1 = scmp.lt.s32.totalorder %s3859_s9, %s3859_s9 }
  0x40   :  { %p3866_p2 = por %p3865_p1, %p3864_p0 }
  0x42   :  { %p3867_p3 = pnand %p3866_p2, %p3860_p13 }
  0x44   :  { %3870 = shalt.err (!%p3867_p3)
}
  0x45   :  { %27 = dma.hbm_to_vmem [thread:$0]  %s4324_s0, 32, %s25_s13, [#allocation3]  }
  0x46   :  { %s3977_s11 = smov [#allocation6]   ;;  %s3978_s14 = smov [#allocation9]  }
  0x47   :  { %s46_s12 = sshll.u32 %s3977_s11, 4  ;;  %s67_s15 = sshll.u32 %s3978_s14, 4  ;;  %s47_s12 = int_to_ptr.vmem [resolvable:$true] %s46_s12  ;;  %s4083_s15 = int_to_ptr.vmem [resolvable:$true] %s67_s15 }
  0x48   :  { %s3871_s18 = scalar_lea.hbm %s4326_s2, 16 }
  0x49   :  { %p3872_p4 = scmp.ne.s32.totalorder %s4326_s2, %s3871_s18  ;;  %p3875_p5 = scmp.lt.u32.totalorder %s3871_s18, %s4326_s2 }
  0x4b   :  { %p3877_p6 = pnand %p3875_p5, %p3872_p4 }
  0x4d   :  { %3880 = shalt.err (!%p3877_p6)
}
  0x4e   :  { %s3881_s0 = scalar_lea.vmem %s47_s12, 16  ;;  %s3885_s13 = scalar_lea.vmem %s47_s12, 32 }
  0x4f   :  { %p3882_p7 = scmp.ne.s32.totalorder %s47_s12, %s3881_s0  ;;  %p3886_p8 = scmp.lt.s32.totalorder %s47_s12, %s47_s12 }
  0x50   :  { %p3887_p9 = scmp.lt.s32.totalorder %s3885_s13, %s3881_s0 }
  0x52   :  { %p3888_p10 = por %p3887_p9, %p3886_p8 }
  0x54   :  { %p3889_p11 = pnand %p3888_p10, %p3882_p7 }
  0x56   :  { %3892 = shalt.err (!%p3889_p11)
}
  0x57   :  { %49 = dma.hbm_to_vmem [thread:$0]  %s4326_s2, 16, %s47_s12, [#allocation5]  }
  0x58   :  { %s3893_s26 = scalar_lea.hbm %s4328_s4, 6144 }
  0x59   :  { %p3894_p12 = scmp.ne.s32.totalorder %s4328_s4, %s3893_s26  ;;  %p3897_p13 = scmp.lt.u32.totalorder %s3893_s26, %s4328_s4 }
  0x5b   :  { %p3899_p0 = pnand %p3897_p13, %p3894_p12 }
  0x5d   :  { %3902 = shalt.err (!%p3899_p0)
}
  0x5e   :  { %s3903_s5 = scalar_lea.vmem %s4083_s15, 6144  ;;  %p3908_p2 = scmp.lt.s32.totalorder %s4083_s15, %s4083_s15 }
  0x5f   :  { %p3904_p1 = scmp.ne.s32.totalorder %s4083_s15, %s3903_s5  ;;  %p3909_p3 = scmp.lt.s32.totalorder %s3903_s5, %s3903_s5 }
  0x61   :  { %p3910_p4 = por %p3909_p3, %p3908_p2 }
  0x63   :  { %p3911_p5 = pnand %p3910_p4, %p3904_p1 }
  0x65   :  { %3914 = shalt.err (!%p3911_p5)
}
  0x66   :  { %73 = dma.hbm_to_vmem [thread:$0]  %s4328_s4, 6144, %s4083_s15, [#allocation8], %s3973_s1, %s3973_s1, %s3974_s28  }
  0x67   :  { %s3979_s11 = smov [#allocation12]   ;;  %s3915_s17 = scalar_lea.hbm %s4330_s6, 73728 }
  0x68   :  { %s89_s12 = sshll.u32 %s3979_s11, 4  ;;  %p3916_p6 = scmp.ne.s32.totalorder %s4330_s6, %s3915_s17  ;;  %s90_s12 = int_to_ptr.vmem [resolvable:$true] %s89_s12 }
  0x69   :  { %p3919_p7 = scmp.lt.u32.totalorder %s3915_s17, %s4330_s6 }
  0x6b   :  { %p3921_p8 = pnand %p3919_p7, %p3916_p6 }
  0x6d   :  { %3924 = shalt.err (!%p3921_p8)
}
  0x6e   :  { %s3925_s20 = scalar_lea.vmem %s90_s12, 73728  ;;  %p3930_p10 = scmp.lt.s32.totalorder %s90_s12, %s90_s12 }
  0x6f   :  { %p3926_p9 = scmp.ne.s32.totalorder %s90_s12, %s3925_s20  ;;  %p3931_p11 = scmp.lt.s32.totalorder %s3925_s20, %s3925_s20 }
  0x71   :  { %p3932_p12 = por %p3931_p11, %p3930_p10 }
  0x73   :  { %p3933_p13 = pnand %p3932_p12, %p3926_p9 }
  0x75   :  { %3936 = shalt.err (!%p3933_p13)
}
  0x76   :  { %s3980_s4 = smov 384   ;;  %s3981_s1 = smov 24  }
  0x77   :  { %95 = dma.hbm_to_vmem [thread:$0]  %s4330_s6, 73728, %s90_s12, [#allocation11], %s3980_s4, %s3980_s4, %s3981_s1  }
  0x78   :  { %s3982_s0 = smov [#allocation13]   ;;  %s3937_s24 = scalar_lea.hbm %s4331_s7, 48 }
  0x79   :  { %s102_s13 = sshll.u32 %s3982_s0, 4  ;;  %p3938_p0 = scmp.ne.s32.totalorder %s4331_s7, %s3937_s24  ;;  %s103_s13 = int_to_ptr.vmem [resolvable:$true] %s102_s13 }
  0x7a   :  { %p3941_p1 = scmp.lt.u32.totalorder %s3937_s24, %s4331_s7 }
  0x7c   :  { %p3943_p2 = pnand %p3941_p1, %p3938_p0 }
  0x7e   :  { %3946 = shalt.err (!%p3943_p2)
}
  0x7f   :  { %s3947_s30 = scalar_lea.vmem %s103_s13, 48  ;;  %s3951_s6 = scalar_lea.vmem %s103_s13, 64 }
  0x80   :  { %p3948_p3 = scmp.ne.s32.totalorder %s103_s13, %s3947_s30  ;;  %p3952_p4 = scmp.lt.s32.totalorder %s103_s13, %s103_s13 }
  0x81   :  { %p3953_p5 = scmp.lt.s32.totalorder %s3951_s6, %s3947_s30 }
  0x83   :  { %p3954_p6 = por %p3953_p5, %p3952_p4 }
  0x85   :  { %p3955_p7 = pnand %p3954_p6, %p3948_p3 }
  0x87   :  { %3958 = shalt.err (!%p3955_p7)
}
  0x88   :  { %105 = dma.hbm_to_vmem [thread:$0]  %s4331_s7, 48, %s103_s13, [#allocation14]  }
  0x89   :  { %3959 = dma.done.wait [#allocation3], 32  }
  0x8a   :  { %3960 = vsyncadd [#allocation3], 4294967264 }
  0x8b   :  { %3961 = dma.done.wait [#allocation5], 528  }
  0x8c   :  { %3962 = vsyncadd [#allocation5], 4294966768 }
  0x8d   :  { %3963 = dma.done.wait [#allocation8], 18432  }
  0x8e   :  { %3964 = vsyncadd [#allocation8], 4294948864 }
  0x8f   :  { %3965 = dma.done.wait [#allocation11], 73920  }
  0x90   :  { %3966 = vsyncadd [#allocation11], 4294893376 }
  0x91   :  { %3967 = dma.done.wait [#allocation14], 48  }
  0x92   :  { %3968 = vsyncadd [#allocation14], 4294967248  ;;  %v3983_v0 = vmov 0.0|0.0   ;;  %vm3984_vm0 = vmmov 0   ;;  %v3985_v1 = vmov 0.0   ;;  %v131_v2 = vld [vmem:[#allocation4] sm:$0xff] }
  0x93   :  { %3014 = vmatprep.subr.bf16.mxu0 %v3983_v0  ;;  %3011 = vmatprep.mubr.msk.f32.mxu0 %vm3984_vm0, %v3985_v1  ;;  %v132_v3 = vld [vmem:[#allocation4 + $0x8] sm:$0xff]  ;;  %v133_v4 = vld [vmem:[#allocation4 + $0x10] sm:$0xff]  ;;  %v134_v6 = vld [vmem:[#allocation4 + $0x18] sm:$0xff]  ;;  %vm142_vm1 = vcmask 261120   ;;  %vm787_vm2 = vcmask 523264  }
  0x94   :  { %567 = vmatprep.mubr.f32.mxu1 %v3985_v1  ;;  %v3015_v5 = vpack.c.bf16 %v132_v3, %v131_v2  ;;  %v314_v7 = vld [vmem:[#allocation9 + $0x8] sm:$0xff]  ;;  %v3018_v9 = vpack.c.bf16 %v134_v6, %v133_v4  ;;  %v313_v11 = vld [vmem:[#allocation9] sm:$0xff]  ;;  %v4143_v15 = vld [vmem:[#allocation2] sm:$0x3] }
  0x95   :  { %v326_v8 = vld [vmem:[#allocation9 + $0x68] sm:$0xff]  ;;  %v325_v12 = vld [vmem:[#allocation9 + $0x60] sm:$0xff]  ;;  %v316_v25 = vld [vmem:[#allocation9 + $0x18] sm:$0xff] }
  0x96   :  { %3016 = vmatpush3.bf16.msra.mxu0 %v3015_v5  ;;  %v3020_v10 = vpack.c.bf16 %v326_v8, %v314_v7  ;;  %v338_v13 = vld [vmem:[#allocation9 + $0xc8] sm:$0xff]  ;;  %v3022_v16 = vpack.c.bf16 %v325_v12, %v313_v11  ;;  %v337_v17 = vld [vmem:[#allocation9 + $0xc0] sm:$0xff]  ;;  %v328_v26 = vld [vmem:[#allocation9 + $0x78] sm:$0xff] }
  0x97   :  { %3017 = vmatprep.subr.bf16.mxu0 %v3983_v0  ;;  %v350_v14 = vld [vmem:[#allocation9 + $0x128] sm:$0xff]  ;;  %v349_v21 = vld [vmem:[#allocation9 + $0x120] sm:$0xff]  ;;  %v315_v31 = vld [vmem:[#allocation9 + $0x10] sm:$0xff]  ;;  %v3028_v35 = vpack.c.bf16 %v328_v26, %v316_v25 }
  0x98   :  { %v318_v18 = vld [vmem:[#allocation9 + $0x28] sm:$0xff]  ;;  %v3024_v20 = vpack.c.bf16 %v350_v14, %v338_v13  ;;  %v317_v23 = vld [vmem:[#allocation9 + $0x20] sm:$0xff]  ;;  %v3026_v30 = vpack.c.bf16 %v349_v21, %v337_v17  ;;  %v327_v36 = vld [vmem:[#allocation9 + $0x70] sm:$0xff] }
  0x99   :  { %v330_v19 = vld [vmem:[#allocation9 + $0x88] sm:$0xff]  ;;  %v329_v24 = vld [vmem:[#allocation9 + $0x80] sm:$0xff]  ;;  %v340_v40 = vld [vmem:[#allocation9 + $0xd8] sm:$0xff]  ;;  %v3030_v45 = vpack.c.bf16 %v327_v36, %v315_v31 }
  0x9a   :  { %3019 = vmatpush3.bf16.msra.mxu0 %v3018_v9  ;;  %v3036_v22 = vpack.c.bf16 %v330_v19, %v318_v18  ;;  %v3038_v27 = vpack.c.bf16 %v329_v24, %v317_v23  ;;  %v342_v28 = vld [vmem:[#allocation9 + $0xe8] sm:$0xff]  ;;  %v341_v33 = vld [vmem:[#allocation9 + $0xe0] sm:$0xff]  ;;  %v352_v41 = vld [vmem:[#allocation9 + $0x138] sm:$0xff] }
  0x9b   :  { %3021 = vmatprep.subr.bf16.mxu0 %v3020_v10  ;;  %v354_v29 = vld [vmem:[#allocation9 + $0x148] sm:$0xff]  ;;  %v353_v34 = vld [vmem:[#allocation9 + $0x140] sm:$0xff]  ;;  %v3032_v48 = vpack.c.bf16 %v352_v41, %v340_v40  ;;  %v339_v49 = vld [vmem:[#allocation9 + $0xd0] sm:$0xff] }
  0x9c   :  { %3037 = vmatprep.subr.bf16.mxu1 %v3036_v22  ;;  %v3040_v32 = vpack.c.bf16 %v354_v29, %v342_v28  ;;  %v3042_v37 = vpack.c.bf16 %v353_v34, %v341_v33  ;;  %v322_v38 = vld [vmem:[#allocation9 + $0x48] sm:$0xff]  ;;  %v321_v43 = vld [vmem:[#allocation9 + $0x40] sm:$0xff]  ;;  %v351_v50 = vld [vmem:[#allocation9 + $0x130] sm:$0xff] }
  0x9d   :  { %3012 = vmatmul.mubr.msk.f32.vlgmr.msra.gmra.mrb[0].mxu0 %vm142_vm1, %v4143_v15  ;;  %3039 = vmatpush1.bf16.msra.mxu1 %v3038_v27  ;;  %v334_v39 = vld [vmem:[#allocation9 + $0xa8] sm:$0xff]  ;;  %v333_v44 = vld [vmem:[#allocation9 + $0xa0] sm:$0xff]  ;;  %v320_v51 = vld [vmem:[#allocation9 + $0x38] sm:$0xff]  ;;  %v3034_v57 = vpack.c.bf16 %v351_v50, %v339_v49 }
  0x9e   :  { %3023 = vmatpush1.bf16.msra.mxu0 %v3022_v16  ;;  %425 = vmatprep.mubr.f32.mxu0 %v3985_v1  ;;  %v3052_v42 = vpack.c.bf16 %v334_v39, %v322_v38  ;;  %v346_v46 = vld [vmem:[#allocation9 + $0x108] sm:$0xff]  ;;  %v332_v52 = vld [vmem:[#allocation9 + $0x98] sm:$0xff]  ;;  %v3054_v53 = vpack.c.bf16 %v333_v44, %v321_v43  ;;  %v345_v55 = vld [vmem:[#allocation9 + $0x100] sm:$0xff] }
  0x9f   :  { %3025 = vmatprep.subr.bf16.mxu0 %v3024_v20  ;;  %3041 = vmatprep.subr.bf16.mxu1 %v3040_v32  ;;  %v358_v47 = vld [vmem:[#allocation9 + $0x168] sm:$0xff]  ;;  %v357_v56 = vld [vmem:[#allocation9 + $0x160] sm:$0xff]  ;;  %v3044_v60 = vpack.c.bf16 %v332_v52, %v320_v51  ;;  %v319_v61 = vld [vmem:[#allocation9 + $0x30] sm:$0xff] }
  0xa0   :  { %v3056_v54 = vpack.c.bf16 %v358_v47, %v346_v46  ;;  %v222_v58 = vld [vmem:[#allocation7 + $0x28] sm:$0xff]  ;;  %v331_v62 = vld [vmem:[#allocation9 + $0x90] sm:$0xff]  ;;  %v344_v63 = vld [vmem:[#allocation9 + $0xf8] sm:$0xff]  ;;  %v3058_v2 = vpack.c.bf16 %v357_v56, %v345_v55 }
  0xa1   :  { %3043 = vmatpush1.bf16.msra.mxu1 %v3042_v37  ;;  %v234_v59 = vld [vmem:[#allocation7 + $0x88] sm:$0xff]  ;;  %v356_v0 = vld [vmem:[#allocation9 + $0x158] sm:$0xff]  ;;  %v221_v4 = vld [vmem:[#allocation7 + $0x20] sm:$0xff]  ;;  %v3046_v6 = vpack.c.bf16 %v331_v62, %v319_v61 }
  0xa2   :  { %3027 = vmatpush1.bf16.msra.mxu0 %v3026_v30  ;;  %3053 = vmatprep.subr.bf16.mxu1 %v3052_v42  ;;  %v3100_v3 = vpack.c.bf16 %v234_v59, %v222_v58  ;;  %v233_v5 = vld [vmem:[#allocation7 + $0x80] sm:$0xff]  ;;  %v246_v7 = vld [vmem:[#allocation7 + $0xe8] sm:$0xff]  ;;  %v3048_v9 = vpack.c.bf16 %v356_v0, %v344_v63  ;;  %v343_v10 = vld [vmem:[#allocation9 + $0xf0] sm:$0xff] }
  0xa3   :  { %3029 = vmatprep.subr.bf16.mxu0 %v3028_v35  ;;  %v258_v8 = vld [vmem:[#allocation7 + $0x148] sm:$0xff]  ;;  %v355_v11 = vld [vmem:[#allocation9 + $0x150] sm:$0xff]  ;;  %v324_v12 = vld [vmem:[#allocation9 + $0x58] sm:$0xff]  ;;  %v3102_v14 = vpack.c.bf16 %v233_v5, %v221_v4 }
  0xa4   :  { %2778 = vmatmul.mubr.msk.f32.vlgmr.msra.gmra.mrb[0].mxu1 %vm142_vm1, %v4143_v15  ;;  %v336_v13 = vld [vmem:[#allocation9 + $0xb8] sm:$0xff]  ;;  %v3104_v16 = vpack.c.bf16 %v258_v8, %v246_v7  ;;  %v245_v17 = vld [vmem:[#allocation7 + $0xe0] sm:$0xff]  ;;  %v3050_v19 = vpack.c.bf16 %v355_v11, %v343_v10  ;;  %v270_v20 = vld [vmem:[#allocation7 + $0x1a8] sm:$0xff] }
  0xa5   :  { %2776 = vmatmul.mubr.msk.f32.vlgmr.msra.gmra.mrb[2].mxu0 %vm142_vm1, %v4143_v15  ;;  %3055 = vmatpush1.bf16.msra.mxu1 %v3054_v53  ;;  %v257_v18 = vld [vmem:[#allocation7 + $0x140] sm:$0xff]  ;;  %v282_v21 = vld [vmem:[#allocation7 + $0x208] sm:$0xff]  ;;  %v3060_v22 = vpack.c.bf16 %v336_v13, %v324_v12  ;;  %v323_v23 = vld [vmem:[#allocation9 + $0x50] sm:$0xff] }
  0xa6   :  { %3031 = vmatpush1.bf16.msra.mxu0 %v3030_v45  ;;  %496 = vmatprep.mubr.f32.mxu0 %v3985_v1  ;;  %v335_v24 = vld [vmem:[#allocation9 + $0xb0] sm:$0xff]  ;;  %v348_v25 = vld [vmem:[#allocation9 + $0x118] sm:$0xff]  ;;  %v3106_v27 = vpack.c.bf16 %v257_v18, %v245_v17  ;;  %v3108_v28 = vpack.c.bf16 %v282_v21, %v270_v20  ;;  %v269_v29 = vld [vmem:[#allocation7 + $0x1a0] sm:$0xff] }
  0xa7   :  { %3033 = vmatprep.subr.bf16.mxu0 %v3032_v48  ;;  %709 = vmatprep.mubr.f32.mxu1 %v3985_v1  ;;  %v360_v26 = vld [vmem:[#allocation9 + $0x178] sm:$0xff]  ;;  %v281_v30 = vld [vmem:[#allocation7 + $0x200] sm:$0xff]  ;;  %v3062_v31 = vpack.c.bf16 %v335_v24, %v323_v23  ;;  %v347_v33 = vld [vmem:[#allocation9 + $0x110] sm:$0xff] }
  0xa8   :  { %3057 = vmatprep.subr.bf16.mxu1 %v3056_v54  ;;  %v3064_v32 = vpack.c.bf16 %v360_v26, %v348_v25  ;;  %v359_v34 = vld [vmem:[#allocation9 + $0x170] sm:$0xff]  ;;  %v218_v35 = vld [vmem:[#allocation7 + $0x8] sm:$0xff]  ;;  %v3110_v37 = vpack.c.bf16 %v281_v30, %v269_v29  ;;  %v217_v40 = vld [vmem:[#allocation7] sm:$0xff] }
  0xa9   :  { %3059 = vmatpush1.bf16.msra.mxu1 %v3058_v2  ;;  %v230_v36 = vld [vmem:[#allocation7 + $0x68] sm:$0xff]  ;;  %v3066_v38 = vpack.c.bf16 %v359_v34, %v347_v33  ;;  %v229_v41 = vld [vmem:[#allocation7 + $0x60] sm:$0xff]  ;;  %v232_v4 = vld [vmem:[#allocation7 + $0x78] sm:$0xff] }
  0xaa   :  { %3035 = vmatpush1.bf16.msra.mxu0 %v3034_v57  ;;  %3101 = vmatprep.subr.bf16.mxu1 %v3100_v3  ;;  %v3068_v39 = vpack.c.bf16 %v230_v36, %v218_v35  ;;  %v242_v42 = vld [vmem:[#allocation7 + $0xc8] sm:$0xff]  ;;  %v3070_v44 = vpack.c.bf16 %v229_v41, %v217_v40  ;;  %v241_v46 = vld [vmem:[#allocation7 + $0xc0] sm:$0xff]  ;;  %v220_v3 = vld [vmem:[#allocation7 + $0x18] sm:$0xff] }
  0xab   :  { %3045 = vmatprep.subr.bf16.mxu0 %v3044_v60  ;;  %v254_v43 = vld [vmem:[#allocation7 + $0x128] sm:$0xff]  ;;  %v253_v47 = vld [vmem:[#allocation7 + $0x120] sm:$0xff]  ;;  %v219_v10 = vld [vmem:[#allocation7 + $0x10] sm:$0xff] }
  0xac   :  { %2780 = vmatmul.mubr.msk.f32.vlgmr.msra.gmra.mrb[2].mxu1 %vm142_vm1, %v4143_v15  ;;  %v3072_v45 = vpack.c.bf16 %v254_v43, %v242_v42  ;;  %v266_v48 = vld [vmem:[#allocation7 + $0x188] sm:$0xff]  ;;  %v3074_v50 = vpack.c.bf16 %v253_v47, %v241_v46  ;;  %v265_v52 = vld [vmem:[#allocation7 + $0x180] sm:$0xff]  ;;  %v231_v11 = vld [vmem:[#allocation7 + $0x70] sm:$0xff] }
  0xad   :  { %2777 = vmatmul.mubr.msk.f32.vlgmr.msra.gmra.mrb[4].mxu0 %vm142_vm1, %v4143_v15  ;;  %3103 = vmatpush1.bf16.msra.mxu1 %v3102_v14  ;;  %v278_v49 = vld [vmem:[#allocation7 + $0x1e8] sm:$0xff]  ;;  %v277_v53 = vld [vmem:[#allocation7 + $0x1e0] sm:$0xff]  ;;  %v244_v14 = vld [vmem:[#allocation7 + $0xd8] sm:$0xff] }
  0xae   :  { %3047 = vmatpush1.bf16.msra.mxu0 %v3046_v6  ;;  %638 = vmatprep.mubr.f32.mxu0 %v3985_v1  ;;  %v3076_v51 = vpack.c.bf16 %v278_v49, %v266_v48  ;;  %v3078_v54 = vpack.c.bf16 %v277_v53, %v265_v52  ;;  %v290_v55 = vld [vmem:[#allocation7 + $0x248] sm:$0xff]  ;;  %v289_v60 = vld [vmem:[#allocation7 + $0x240] sm:$0xff]  ;;  %v3084_v6 = vpack.c.bf16 %v232_v4, %v220_v3  ;;  %v256_v17 = vld [vmem:[#allocation7 + $0x138] sm:$0xff] }
  0xaf   :  { %3049 = vmatprep.subr.bf16.mxu0 %v3048_v9  ;;  %997 = vmatprep.mubr.f32.mxu1 %v3985_v1  ;;  %v302_v56 = vld [vmem:[#allocation7 + $0x2a8] sm:$0xff]  ;;  %v301_v61 = vld [vmem:[#allocation7 + $0x2a0] sm:$0xff]  ;;  %v2774_v9 = vld [vmem:[#allocation6] ss:$0 sm:$0xff] }
  0xb0   :  { %3105 = vmatprep.subr.bf16.mxu1 %v3104_v16  ;;  %v294_v57 = vld [vmem:[#allocation7 + $0x268] sm:$0xff]  ;;  %v3080_v58 = vpack.c.bf16 %v302_v56, %v290_v55  ;;  %v3082_v62 = vpack.c.bf16 %v301_v61, %v289_v60  ;;  %v293_v63 = vld [vmem:[#allocation7 + $0x260] sm:$0xff]  ;;  %v243_v24 = vld [vmem:[#allocation7 + $0xd0] sm:$0xff] }
  0xb1   :  { %3107 = vmatpush1.bf16.msra.mxu1 %v3106_v27  ;;  %v306_v59 = vld [vmem:[#allocation7 + $0x2c8] sm:$0xff]  ;;  %v305_v0 = vld [vmem:[#allocation7 + $0x2c0] sm:$0xff]  ;;  %v255_v25 = vld [vmem:[#allocation7 + $0x130] sm:$0xff]  ;;  %v3088_v27 = vpack.c.bf16 %v256_v17, %v244_v14 }
  0xb2   :  { %3051 = vmatpush1.bf16.msra.mxu0 %v3050_v19  ;;  %3109 = vmatprep.subr.bf16.mxu1 %v3108_v28  ;;  %v3114_v2 = vpack.c.bf16 %v305_v0, %v293_v63  ;;  %v226_v5 = vld [vmem:[#allocation7 + $0x48] sm:$0xff]  ;;  %v225_v12 = vld [vmem:[#allocation7 + $0x40] sm:$0xff]  ;;  %v3090_v35 = vpack.c.bf16 %v255_v25, %v243_v24  ;;  %v292_v43 = vld [vmem:[#allocation7 + $0x258] sm:$0xff] }
  0xb3   :  { %3061 = vmatprep.subr.bf16.mxu0 %v3060_v22  ;;  %v238_v7 = vld [vmem:[#allocation7 + $0xa8] sm:$0xff]  ;;  %v237_v13 = vld [vmem:[#allocation7 + $0xa0] sm:$0xff]  ;;  %v3086_v22 = vpack.c.bf16 %v231_v11, %v219_v10  ;;  %v291_v49 = vld [vmem:[#allocation7 + $0x250] sm:$0xff] }
  0xb4   :  { %v3132_v8 = vpack.c.bf16 %v238_v7, %v226_v5  ;;  %v250_v18 = vld [vmem:[#allocation7 + $0x108] sm:$0xff]  ;;  %v3134_v23 = vpack.c.bf16 %v237_v13, %v225_v12  ;;  %v249_v29 = vld [vmem:[#allocation7 + $0x100] sm:$0xff]  ;;  %v224_v55 = vld [vmem:[#allocation7 + $0x38] sm:$0xff] }
  0xb5   :  { %2779 = vmatmul.mubr.msk.f32.vlgmr.msra.gmra.mrb[6].mxu0 %vm142_vm1, %v4143_v15  ;;  %3111 = vmatpush1.bf16.msra.mxu1 %v3110_v37  ;;  %v262_v19 = vld [vmem:[#allocation7 + $0x168] sm:$0xff]  ;;  %v261_v30 = vld [vmem:[#allocation7 + $0x160] sm:$0xff]  ;;  %v267_v37 = vld [vmem:[#allocation7 + $0x190] sm:$0xff] }
  0xb6   :  { %3063 = vmatpush1.bf16.msra.mxu0 %v3062_v31  ;;  %780 = vmatprep.mubr.f32.mxu0 %v3985_v1  ;;  %v3136_v28 = vpack.c.bf16 %v262_v19, %v250_v18  ;;  %v268_v31 = vld [vmem:[#allocation7 + $0x198] sm:$0xff]  ;;  %v274_v33 = vld [vmem:[#allocation7 + $0x1c8] sm:$0xff]  ;;  %v3138_v36 = vpack.c.bf16 %v261_v30, %v249_v29  ;;  %v273_v41 = vld [vmem:[#allocation7 + $0x1c0] sm:$0xff] }
  0xb7   :  { %3065 = vmatprep.subr.bf16.mxu0 %v3064_v32  ;;  %v280_v32 = vld [vmem:[#allocation7 + $0x1f8] sm:$0xff]  ;;  %v286_v34 = vld [vmem:[#allocation7 + $0x228] sm:$0xff]  ;;  %v285_v42 = vld [vmem:[#allocation7 + $0x220] sm:$0xff] }
  0xb8   :  { %v3140_v40 = vpack.c.bf16 %v286_v34, %v274_v33  ;;  %v310_v46 = vld [vmem:[#allocation7 + $0x2e8] sm:$0xff]  ;;  %v3142_v48 = vpack.c.bf16 %v285_v42, %v273_v41  ;;  %v297_v53 = vld [vmem:[#allocation7 + $0x280] sm:$0xff]  ;;  %v236_v56 = vld [vmem:[#allocation7 + $0x98] sm:$0xff] }
  0xb9   :  { %v3116_v61 = vpack.c.bf16 %v236_v56, %v224_v55  ;;  %v248_v63 = vld [vmem:[#allocation7 + $0xf8] sm:$0xff]  ;;  %v1401_v3 = vld [vmem:[#allocation12 + $0x300] sm:$0xff]  ;;  %v1404_v4 = vld [vmem:[#allocation12 + $0x318] sm:$0xff] }
  0xba   :  { %3067 = vmatpush1.bf16.msra.mxu0 %v3066_v38  ;;  %v279_v38 = vld [vmem:[#allocation7 + $0x1f0] sm:$0xff]  ;;  %v1408_v5 = vld [vmem:[#allocation12 + $0x338] sm:$0xff]  ;;  %v272_v11 = vld [vmem:[#allocation7 + $0x1b8] sm:$0xff]  ;;  %v3230_v12 = vpack.c.bf16 %v1404_v4, %v1401_v3 }
  0xbb   :  { %3069 = vmatprep.subr.bf16.mxu0 %v3068_v39  ;;  %v3092_v39 = vpack.c.bf16 %v280_v32, %v268_v31  ;;  %v3094_v47 = vpack.c.bf16 %v279_v38, %v267_v37  ;;  %v259_v10 = vld [vmem:[#allocation7 + $0x150] sm:$0xff]  ;;  %v284_v13 = vld [vmem:[#allocation7 + $0x218] sm:$0xff]  ;;  %v1416_v30 = vld [vmem:[#allocation12 + $0x378] sm:$0xff] }
  0xbc   :  { %v1410_v17 = vld [vmem:[#allocation12 + $0x348] sm:$0xff]  ;;  %v1417_v19 = vld [vmem:[#allocation12 + $0x380] sm:$0xff]  ;;  %v1420_v31 = vld [vmem:[#allocation12 + $0x398] sm:$0xff] }
  0xbd   :  { %2781 = vmatmul.mubr.msk.f32.vlgmr.msra.gmra.mrb[8].mxu0 %vm142_vm1, %v4143_v15  ;;  %v3112_v15 = vpack.c.bf16 %v306_v59, %v294_v57  ;;  %v1402_v57 = vld [vmem:[#allocation12 + $0x308] sm:$0xff]  ;;  %v1413_v29 = vld [vmem:[#allocation12 + $0x360] sm:$0xff]  ;;  %v1423_v32 = vld [vmem:[#allocation12 + $0x3b0] sm:$0xff] }
  0xbe   :  { %3071 = vmatpush1.bf16.msra.mxu0 %v3070_v44  ;;  %855 = vmatprep.mubr.f32.mxu0 %v3985_v1  ;;  %v304_v44 = vld [vmem:[#allocation7 + $0x2b8] sm:$0xff]  ;;  %v3238_v38 = vpack.c.bf16 %v1416_v30, %v1413_v29  ;;  %v1432_v55 = vld [vmem:[#allocation12 + $0x3f8] sm:$0xff]  ;;  %v1441_v4 = vld [vmem:[#allocation12 + $0x440] sm:$0xff] }
  0xbf   :  { %3073 = vmatprep.subr.bf16.mxu0 %v3072_v45  ;;  %3113 = vmatprep.subr.bf16.mxu1 %v3112_v15  ;;  %v298_v45 = vld [vmem:[#allocation7 + $0x288] sm:$0xff]  ;;  %v223_v15 = vld [vmem:[#allocation7 + $0x30] sm:$0xff]  ;;  %v296_v24 = vld [vmem:[#allocation7 + $0x278] sm:$0xff] }
  0xc0   :  { %3115 = vmatpush1.bf16.msra.mxu1 %v3114_v2  ;;  %v3144_v52 = vpack.c.bf16 %v310_v46, %v298_v45  ;;  %v260_v2 = vld [vmem:[#allocation7 + $0x158] sm:$0xff]  ;;  %v1453_v29 = vld [vmem:[#allocation12 + $0x4a0] sm:$0xff] }
  0xc1   :  { %3133 = vmatprep.subr.bf16.mxu1 %v3132_v8  ;;  %v3120_v8 = vpack.c.bf16 %v260_v2, %v248_v63  ;;  %v1414_v18 = vld [vmem:[#allocation12 + $0x368] sm:$0xff]  ;;  %v1419_v41 = vld [vmem:[#allocation12 + $0x390] sm:$0xff] }
  0xc2   :  { %3075 = vmatpush1.bf16.msra.mxu0 %v3074_v50  ;;  %v303_v50 = vld [vmem:[#allocation7 + $0x2b0] sm:$0xff]  ;;  %v228_v37 = vld [vmem:[#allocation7 + $0x58] sm:$0xff] }
  0xc3   :  { %3077 = vmatprep.subr.bf16.mxu0 %v3076_v51  ;;  %v3096_v51 = vpack.c.bf16 %v304_v44, %v292_v43  ;;  %v3098_v59 = vpack.c.bf16 %v303_v50, %v291_v49  ;;  %v1422_v42 = vld [vmem:[#allocation12 + $0x3a8] sm:$0xff]  ;;  %v1429_v44 = vld [vmem:[#allocation12 + $0x3e0] sm:$0xff]  ;;  %v1435_v56 = vld [vmem:[#allocation12 + $0x410] sm:$0xff] }
  0xc4   :  { %v1426_v43 = vld [vmem:[#allocation12 + $0x3c8] sm:$0xff]  ;;  %v3242_v50 = vpack.c.bf16 %v1422_v42, %v1419_v41  ;;  %v3248_v63 = vpack.c.bf16 %v1435_v56, %v1432_v55  ;;  %v1459_v41 = vld [vmem:[#allocation12 + $0x4d0] sm:$0xff]  ;;  %v1317_v56 = vld [vmem:[#allocation12 + $0x60] sm:$0xff] }
  0xc5   :  { %v252_v49 = vld [vmem:[#allocation7 + $0x118] sm:$0xff] }
  0xc6   :  { %3079 = vmatpush1.bf16.msra.mxu0 %v3078_v54  ;;  %v309_v54 = vld [vmem:[#allocation7 + $0x2e0] sm:$0xff]  ;;  %v1434_v2 = vld [vmem:[#allocation12 + $0x408] sm:$0xff] }
  0xc7   :  { %3081 = vmatprep.subr.bf16.mxu0 %v3080_v58  ;;  %v1405_v58 = vld [vmem:[#allocation12 + $0x320] sm:$0xff]  ;;  %v3146_v60 = vpack.c.bf16 %v309_v54, %v297_v53  ;;  %v1428_v54 = vld [vmem:[#allocation12 + $0x3d8] sm:$0xff]  ;;  %v1438_v3 = vld [vmem:[#allocation12 + $0x428] sm:$0xff] }
  0xc8   :  { %v3228_v0 = vpack.c.bf16 %v1405_v58, %v1402_v57  ;;  %v1425_v53 = vld [vmem:[#allocation12 + $0x3c0] sm:$0xff] }
  0xca   :  { %3083 = vmatpush1.bf16.msra.mxu0 %v3082_v62  ;;  %v235_v62 = vld [vmem:[#allocation7 + $0x90] sm:$0xff] }
  0xcb   :  { %3085 = vmatprep.subr.bf16.mxu0 %v3084_v6  ;;  %v1411_v6 = vld [vmem:[#allocation12 + $0x350] sm:$0xff]  ;;  %v3118_v7 = vpack.c.bf16 %v235_v62, %v223_v15  ;;  %v3246_v15 = vpack.c.bf16 %v1428_v54, %v1425_v53  ;;  %v1465_v53 = vld [vmem:[#allocation12 + $0x500] sm:$0xff] }
  0xcc   :  { %v3232_v14 = vpack.c.bf16 %v1411_v6, %v1408_v5  ;;  %v288_v62 = vld [vmem:[#allocation7 + $0x238] sm:$0xff] }
 0x170   :  { %v212_v16 = vpop.f32.mrb[0].mxu0 }
 0x171   :  { %v213_v20 = vadd.f32 %v2774_v9, %v212_v16  ;;  %v3013_v21 = vpop.f32.mrb[1].mxu0  ;;  %v247_v9 = vld [vmem:[#allocation7 + $0xf0] sm:$0xff]  ;;  %v1407_v16 = vld [vmem:[#allocation12 + $0x330] sm:$0xff] }
 0x172   :  { %v3124_v21 = vpack.c.bf16 %v284_v13, %v272_v11  ;;  %v3234_v25 = vpack.c.bf16 %v1410_v17, %v1407_v16  ;;  %v312_v11 = vld [vmem:[#allocation7 + $0x2f8] sm:$0xff]  ;;  %v1437_v13 = vld [vmem:[#allocation12 + $0x420] sm:$0xff]  ;;  %v1444_v16 = vld [vmem:[#allocation12 + $0x458] sm:$0xff] }
 0x173   :  { %v4166_v26 = vmax.f32 %v213_v20, 0.0  ;;  %v3122_v20 = vpack.c.bf16 %v259_v10, %v247_v9  ;;  %v300_v9 = vld [vmem:[#allocation7 + $0x298] sm:$0xff] }
 0x174   :  { %v1447_v17 = vld [vmem:[#allocation12 + $0x470] sm:$0xff] }
 0x175   :  { %2782 = vmatmul.mubr.msk.f32.vlgmr.msra.gmra.mrb[2].mxu0 %vm787_vm2, %v4166_v26  ;;  %2784 = vmatmul.mubr.msk.f32.vlgmr.msra.gmra.mrb[0].mxu1 %vm787_vm2, %v4166_v26 }
 0x176   :  { %3087 = vmatpush1.bf16.msra.mxu0 %v3086_v22  ;;  %3135 = vmatpush1.bf16.msra.mxu1 %v3134_v23  ;;  %v271_v22 = vld [vmem:[#allocation7 + $0x1b0] sm:$0xff] }
 0x177   :  { %3089 = vmatprep.subr.bf16.mxu0 %v3088_v27  ;;  %3137 = vmatprep.subr.bf16.mxu1 %v3136_v28  ;;  %v283_v23 = vld [vmem:[#allocation7 + $0x210] sm:$0xff]  ;;  %v308_v27 = vld [vmem:[#allocation7 + $0x2d8] sm:$0xff]  ;;  %v3236_v28 = vpack.c.bf16 %v1417_v19, %v1414_v18  ;;  %v3160_v19 = vpack.c.bf16 %v312_v11, %v300_v9  ;;  %v1332_v9 = vld [vmem:[#allocation12 + $0xd8] sm:$0xff] }
 0x178   :  { %926 = vmatprep.mubr.f32.mxu0 %v3985_v1  ;;  %1139 = vmatprep.mubr.f32.mxu1 %v3985_v1  ;;  %v3126_v33 = vpack.c.bf16 %v283_v23, %v271_v22  ;;  %v3128_v34 = vpack.c.bf16 %v308_v27, %v296_v24  ;;  %v1309_v23 = vld [vmem:[#allocation12 + $0x20] sm:$0xff]  ;;  %v3256_v24 = vpack.c.bf16 %v1447_v17, %v1444_v16  ;;  %v1446_v27 = vld [vmem:[#allocation12 + $0x468] sm:$0xff]  ;;  %v1339_v11 = vld [vmem:[#allocation12 + $0x110] sm:$0xff] }
 0x179   :  { %v1338_v16 = vld [vmem:[#allocation12 + $0x108] sm:$0xff] }
 0x17a   :  { %3091 = vmatpush1.bf16.msra.mxu0 %v3090_v35  ;;  %3139 = vmatpush1.bf16.msra.mxu1 %v3138_v36  ;;  %v295_v35 = vld [vmem:[#allocation7 + $0x270] sm:$0xff] }
 0x17b   :  { %3093 = vmatprep.subr.bf16.mxu0 %v3092_v39  ;;  %3141 = vmatprep.subr.bf16.mxu1 %v3140_v40  ;;  %v307_v36 = vld [vmem:[#allocation7 + $0x2d0] sm:$0xff]  ;;  %v240_v39 = vld [vmem:[#allocation7 + $0xb8] sm:$0xff]  ;;  %v3240_v40 = vpack.c.bf16 %v1423_v32, %v1420_v31 }
 0x17c   :  { %v3130_v45 = vpack.c.bf16 %v307_v36, %v295_v35  ;;  %v3148_v46 = vpack.c.bf16 %v240_v39, %v228_v37  ;;  %v1305_v32 = vld [vmem:[#allocation12] sm:$0xff]  ;;  %v1315_v36 = vld [vmem:[#allocation12 + $0x50] sm:$0xff]  ;;  %v1452_v39 = vld [vmem:[#allocation12 + $0x498] sm:$0xff] }
 0x17d   :  { %v1342_v17 = vld [vmem:[#allocation12 + $0x128] sm:$0xff] }
 0x17e   :  { %3095 = vmatpush1.bf16.msra.mxu0 %v3094_v47  ;;  %3143 = vmatpush1.bf16.msra.mxu1 %v3142_v48  ;;  %v227_v47 = vld [vmem:[#allocation7 + $0x50] sm:$0xff] }
 0x17f   :  { %3097 = vmatprep.subr.bf16.mxu0 %v3096_v51  ;;  %3145 = vmatprep.subr.bf16.mxu1 %v3144_v52  ;;  %v239_v48 = vld [vmem:[#allocation7 + $0xb0] sm:$0xff]  ;;  %v264_v51 = vld [vmem:[#allocation7 + $0x178] sm:$0xff]  ;;  %v3244_v52 = vpack.c.bf16 %v1429_v44, %v1426_v43 }
 0x180   :  { %v3150_v57 = vpack.c.bf16 %v239_v48, %v227_v47  ;;  %v3152_v58 = vpack.c.bf16 %v264_v51, %v252_v49  ;;  %v1311_v44 = vld [vmem:[#allocation12 + $0x30] sm:$0xff]  ;;  %v1321_v48 = vld [vmem:[#allocation12 + $0x80] sm:$0xff]  ;;  %v1458_v51 = vld [vmem:[#allocation12 + $0x4c8] sm:$0xff] }
 0x182   :  { %3099 = vmatpush1.bf16.msra.mxu0 %v3098_v59  ;;  %3147 = vmatpush1.bf16.msra.mxu1 %v3146_v60  ;;  %v251_v59 = vld [vmem:[#allocation7 + $0x110] sm:$0xff] }
 0x183   :  { %3117 = vmatprep.subr.bf16.mxu0 %v3116_v61  ;;  %3229 = vmatprep.subr.bf16.mxu1 %v3228_v0  ;;  %v263_v60 = vld [vmem:[#allocation7 + $0x170] sm:$0xff]  ;;  %v276_v61 = vld [vmem:[#allocation7 + $0x1d8] sm:$0xff] }
 0x184   :  { %v1431_v0 = vld [vmem:[#allocation12 + $0x3f0] sm:$0xff]  ;;  %v3154_v5 = vpack.c.bf16 %v263_v60, %v251_v59  ;;  %v3156_v6 = vpack.c.bf16 %v288_v62, %v276_v61  ;;  %v1464_v62 = vld [vmem:[#allocation12 + $0x4f8] sm:$0xff] }
 0x185   :  { %2783 = vmatmul.mubr.msk.f32.vlgmr.msra.gmra.mrb[4].mxu0 %vm787_vm2, %v4166_v26  ;;  %2786 = vmatmul.mubr.msk.f32.vlgmr.msra.gmra.mrb[2].mxu1 %vm787_vm2, %v4166_v26  ;;  %v3250_v10 = vpack.c.bf16 %v1434_v2, %v1431_v0  ;;  %v1327_v60 = vld [vmem:[#allocation12 + $0xb0] sm:$0xff]  ;;  %v1326_v2 = vld [vmem:[#allocation12 + $0xa8] sm:$0xff] }
 0x186   :  { %3119 = vmatpush1.bf16.msra.mxu0 %v3118_v7  ;;  %1068 = vmatprep.mubr.f32.mxu0 %v3985_v1  ;;  %v275_v7 = vld [vmem:[#allocation7 + $0x1d0] sm:$0xff]  ;;  %v1323_v0 = vld [vmem:[#allocation12 + $0x90] sm:$0xff] }
 0x187   :  { %3121 = vmatprep.subr.bf16.mxu0 %v3120_v8  ;;  %3231 = vmatpush1.bf16.msra.mxu1 %v3230_v12  ;;  %v287_v8 = vld [vmem:[#allocation7 + $0x230] sm:$0xff]  ;;  %v3252_v12 = vpack.c.bf16 %v1441_v4, %v1438_v3 }
 0x188   :  { %3233 = vmatprep.subr.bf16.mxu1 %v3232_v14  ;;  %v1440_v14 = vld [vmem:[#allocation12 + $0x438] sm:$0xff]  ;;  %v3158_v18 = vpack.c.bf16 %v287_v8, %v275_v7  ;;  %v1330_v4 = vld [vmem:[#allocation12 + $0xc8] sm:$0xff]  ;;  %v1329_v8 = vld [vmem:[#allocation12 + $0xc0] sm:$0xff] }
 0x189   :  { %v3254_v22 = vpack.c.bf16 %v1440_v14, %v1437_v13  ;;  %v1335_v14 = vld [vmem:[#allocation12 + $0xf0] sm:$0xff] }
 0x18a   :  { %3123 = vmatpush1.bf16.msra.mxu0 %v3122_v20  ;;  %v299_v20 = vld [vmem:[#allocation7 + $0x290] sm:$0xff] }
 0x18b   :  { %3125 = vmatprep.subr.bf16.mxu0 %v3124_v21  ;;  %3235 = vmatpush1.bf16.msra.mxu1 %v3234_v25  ;;  %v1306_v21 = vld [vmem:[#allocation12 + $0x8] sm:$0xff]  ;;  %v1443_v25 = vld [vmem:[#allocation12 + $0x450] sm:$0xff] }
 0x18c   :  { %3237 = vmatprep.subr.bf16.mxu1 %v3236_v28  ;;  %v1450_v28 = vld [vmem:[#allocation12 + $0x488] sm:$0xff]  ;;  %v3164_v31 = vpack.c.bf16 %v1309_v23, %v1306_v21  ;;  %v3258_v35 = vpack.c.bf16 %v1446_v27, %v1443_v25  ;;  %v1344_v21 = vld [vmem:[#allocation12 + $0x138] sm:$0xff]  ;;  %v1351_v23 = vld [vmem:[#allocation12 + $0x170] sm:$0xff] }
 0x18d   :  { %v3260_v37 = vpack.c.bf16 %v1453_v29, %v1450_v28  ;;  %v1347_v27 = vld [vmem:[#allocation12 + $0x150] sm:$0xff]  ;;  %v1350_v28 = vld [vmem:[#allocation12 + $0x168] sm:$0xff] }
 0x18e   :  { %3127 = vmatpush1.bf16.msra.mxu0 %v3126_v33  ;;  %v1308_v33 = vld [vmem:[#allocation12 + $0x18] sm:$0xff]  ;;  %v1354_v29 = vld [vmem:[#allocation12 + $0x188] sm:$0xff] }
 0x18f   :  { %3129 = vmatprep.subr.bf16.mxu0 %v3128_v34  ;;  %3239 = vmatpush1.bf16.msra.mxu1 %v3238_v38  ;;  %v1312_v34 = vld [vmem:[#allocation12 + $0x38] sm:$0xff]  ;;  %v1449_v38 = vld [vmem:[#allocation12 + $0x480] sm:$0xff]  ;;  %v3166_v42 = vpack.c.bf16 %v1308_v33, %v1305_v32 }
 0x190   :  { %3241 = vmatprep.subr.bf16.mxu1 %v3240_v40  ;;  %v1456_v40 = vld [vmem:[#allocation12 + $0x4b8] sm:$0xff]  ;;  %v3168_v43 = vpack.c.bf16 %v1315_v36, %v1312_v34  ;;  %v3262_v47 = vpack.c.bf16 %v1452_v39, %v1449_v38  ;;  %v1353_v33 = vld [vmem:[#allocation12 + $0x180] sm:$0xff]  ;;  %v1363_v36 = vld [vmem:[#allocation12 + $0x1d0] sm:$0xff] }
 0x191   :  { %v3264_v49 = vpack.c.bf16 %v1459_v41, %v1456_v40  ;;  %v1356_v34 = vld [vmem:[#allocation12 + $0x198] sm:$0xff]  ;;  %v1359_v39 = vld [vmem:[#allocation12 + $0x1b0] sm:$0xff]  ;;  %v1362_v40 = vld [vmem:[#allocation12 + $0x1c8] sm:$0xff] }
 0x192   :  { %3131 = vmatpush1.bf16.msra.mxu0 %v3130_v45  ;;  %v1314_v45 = vld [vmem:[#allocation12 + $0x48] sm:$0xff] }
 0x193   :  { %3149 = vmatprep.subr.bf16.mxu0 %v3148_v46  ;;  %3243 = vmatpush1.bf16.msra.mxu1 %v3242_v50  ;;  %v1318_v46 = vld [vmem:[#allocation12 + $0x68] sm:$0xff]  ;;  %v1455_v50 = vld [vmem:[#allocation12 + $0x4b0] sm:$0xff]  ;;  %v3170_v54 = vpack.c.bf16 %v1314_v45, %v1311_v44  ;;  %v1365_v44 = vld [vmem:[#allocation12 + $0x1e0] sm:$0xff] }
 0x194   :  { %3245 = vmatprep.subr.bf16.mxu1 %v3244_v52  ;;  %v1462_v52 = vld [vmem:[#allocation12 + $0x4e8] sm:$0xff]  ;;  %v3172_v55 = vpack.c.bf16 %v1321_v48, %v1318_v46  ;;  %v3266_v59 = vpack.c.bf16 %v1458_v51, %v1455_v50  ;;  %v1368_v46 = vld [vmem:[#allocation12 + $0x1f8] sm:$0xff]  ;;  %v1471_v48 = vld [vmem:[#allocation12 + $0x530] sm:$0xff] }
 0x195   :  { %2785 = vmatmul.mubr.msk.f32.vlgmr.msra.gmra.mrb[6].mxu0 %vm787_vm2, %v4166_v26  ;;  %v3268_v61 = vpack.c.bf16 %v1465_v53, %v1462_v52  ;;  %v1366_v41 = vld [vmem:[#allocation12 + $0x1e8] sm:$0xff]  ;;  %v1375_v50 = vld [vmem:[#allocation12 + $0x230] sm:$0xff] }
 0x196   :  { %3151 = vmatpush1.bf16.msra.mxu0 %v3150_v57  ;;  %1210 = vmatprep.mubr.f32.mxu0 %v3985_v1  ;;  %v311_v1 = vld [vmem:[#allocation7 + $0x2f0] sm:$0xff]  ;;  %v1320_v57 = vld [vmem:[#allocation12 + $0x78] sm:$0xff]  ;;  %v1467_v52 = vld [vmem:[#allocation12 + $0x510] sm:$0xff] }
 0x197   :  { %3153 = vmatprep.subr.bf16.mxu0 %v3152_v58  ;;  %3247 = vmatpush1.bf16.msra.mxu1 %v3246_v15  ;;  %v3162_v30 = vpack.c.bf16 %v311_v1, %v299_v20  ;;  %v1324_v58 = vld [vmem:[#allocation12 + $0x98] sm:$0xff]  ;;  %v1461_v15 = vld [vmem:[#allocation12 + $0x4e0] sm:$0xff]  ;;  %v1470_v53 = vld [vmem:[#allocation12 + $0x528] sm:$0xff] }
 0x198   :  { %3249 = vmatprep.subr.bf16.mxu1 %v3248_v63  ;;  %v3174_v63 = vpack.c.bf16 %v1320_v57, %v1317_v56  ;;  %v3270_v3 = vpack.c.bf16 %v1464_v62, %v1461_v15  ;;  %v1341_v1 = vld [vmem:[#allocation12 + $0x120] sm:$0xff]  ;;  %v1374_v56 = vld [vmem:[#allocation12 + $0x228] sm:$0xff]  ;;  %v3274_v57 = vpack.c.bf16 %v1470_v53, %v1467_v52 }
 0x199   :  { %v1381_v15 = vld [vmem:[#allocation12 + $0x260] sm:$0xff] }
 0x19a   :  { %3155 = vmatpush1.bf16.msra.mxu0 %v3154_v5  ;;  %v1333_v5 = vld [vmem:[#allocation12 + $0xe0] sm:$0xff] }
 0x19b   :  { %3157 = vmatprep.subr.bf16.mxu0 %v3156_v6  ;;  %3251 = vmatpush1.bf16.msra.mxu1 %v3250_v10  ;;  %v3178_v6 = vpack.c.bf16 %v1326_v2, %v1323_v0  ;;  %v3180_v7 = vpack.c.bf16 %v1333_v5, %v1330_v4  ;;  %v1336_v10 = vld [vmem:[#allocation12 + $0xf8] sm:$0xff] }
 0x19c   :  { %3253 = vmatprep.subr.bf16.mxu1 %v3252_v12  ;;  %v3182_v12 = vpack.c.bf16 %v1332_v9, %v1329_v8  ;;  %v3184_v13 = vpack.c.bf16 %v1339_v11, %v1336_v10  ;;  %v1380_v4 = vld [vmem:[#allocation12 + $0x258] sm:$0xff]  ;;  %v1483_v8 = vld [vmem:[#allocation12 + $0x590] sm:$0xff] }
 0x19d   :  { %v1387_v9 = vld [vmem:[#allocation12 + $0x290] sm:$0xff] }
 0x19e   :  { %3159 = vmatpush1.bf16.msra.mxu0 %v3158_v18  ;;  %v1345_v18 = vld [vmem:[#allocation12 + $0x140] sm:$0xff]  ;;  %v1479_v11 = vld [vmem:[#allocation12 + $0x570] sm:$0xff] }
 0x19f   :  { %3161 = vmatprep.subr.bf16.mxu0 %v3160_v19  ;;  %3255 = vmatpush1.bf16.msra.mxu1 %v3254_v22  ;;  %v3186_v19 = vpack.c.bf16 %v1338_v16, %v1335_v14  ;;  %v3188_v20 = vpack.c.bf16 %v1345_v18, %v1342_v17  ;;  %v1348_v22 = vld [vmem:[#allocation12 + $0x158] sm:$0xff]  ;;  %v1383_v16 = vld [vmem:[#allocation12 + $0x270] sm:$0xff]  ;;  %v1386_v17 = vld [vmem:[#allocation12 + $0x288] sm:$0xff] }
 0x1a0   :  { %3257 = vmatprep.subr.bf16.mxu1 %v3256_v24  ;;  %v3190_v24 = vpack.c.bf16 %v1344_v21, %v1341_v1  ;;  %v3192_v25 = vpack.c.bf16 %v1351_v23, %v1348_v22  ;;  %v1489_v1 = vld [vmem:[#allocation12 + $0x5c0] sm:$0xff] }
 0x1a1   :  { %v1393_v21 = vld [vmem:[#allocation12 + $0x2c0] sm:$0xff] }
 0x1a2   :  { %3163 = vmatpush1.bf16.msra.mxu0 %v3162_v30  ;;  %v1357_v30 = vld [vmem:[#allocation12 + $0x1a0] sm:$0xff] }
 0x1a3   :  { %3165 = vmatprep.subr.bf16.mxu0 %v3164_v31  ;;  %3259 = vmatpush1.bf16.msra.mxu1 %v3258_v35  ;;  %v3194_v31 = vpack.c.bf16 %v1350_v28, %v1347_v27  ;;  %v3196_v32 = vpack.c.bf16 %v1357_v30, %v1354_v29  ;;  %v1360_v35 = vld [vmem:[#allocation12 + $0x1b8] sm:$0xff]  ;;  %v1485_v23 = vld [vmem:[#allocation12 + $0x5a0] sm:$0xff]  ;;  %v3218_v27 = vpack.c.bf16 %v1386_v17, %v1383_v16  ;;  %v1319_v17 = vld [vmem:[#allocation12 + $0x70] sm:$0xff] }
 0x1a4   :  { %3261 = vmatprep.subr.bf16.mxu1 %v3260_v37  ;;  %v3198_v37 = vpack.c.bf16 %v1356_v34, %v1353_v33  ;;  %v3200_v38 = vpack.c.bf16 %v1363_v36, %v1360_v35  ;;  %v1389_v28 = vld [vmem:[#allocation12 + $0x2a0] sm:$0xff]  ;;  %v1392_v29 = vld [vmem:[#allocation12 + $0x2b8] sm:$0xff]  ;;  %v1495_v33 = vld [vmem:[#allocation12 + $0x5f0] sm:$0xff] }
 0x1a5   :  { %2787 = vmatmul.mubr.msk.f32.vlgmr.msra.gmra.mrb[8].mxu0 %vm787_vm2, %v4166_v26  ;;  %v3176_v26 = vpack.c.bf16 %v1327_v60, %v1324_v58  ;;  %v1474_v60 = vld [vmem:[#allocation12 + $0x548] sm:$0xff]  ;;  %v1399_v34 = vld [vmem:[#allocation12 + $0x2f0] sm:$0xff] }
 0x1a6   :  { %3167 = vmatpush1.bf16.msra.mxu0 %v3166_v42  ;;  %v1369_v42 = vld [vmem:[#allocation12 + $0x200] sm:$0xff]  ;;  %v1491_v36 = vld [vmem:[#allocation12 + $0x5d0] sm:$0xff] }
 0x1a7   :  { %3169 = vmatprep.subr.bf16.mxu0 %v3168_v43  ;;  %3263 = vmatpush1.bf16.msra.mxu1 %v3262_v47  ;;  %v3202_v43 = vpack.c.bf16 %v1362_v40, %v1359_v39  ;;  %v3204_v45 = vpack.c.bf16 %v1369_v42, %v1366_v41  ;;  %v1468_v47 = vld [vmem:[#allocation12 + $0x518] sm:$0xff]  ;;  %v3222_v39 = vpack.c.bf16 %v1392_v29, %v1389_v28  ;;  %v1395_v40 = vld [vmem:[#allocation12 + $0x2d0] sm:$0xff]  ;;  %v1398_v42 = vld [vmem:[#allocation12 + $0x2e8] sm:$0xff] }
 0x1a8   :  { %3265 = vmatprep.subr.bf16.mxu1 %v3264_v49  ;;  %v1372_v49 = vld [vmem:[#allocation12 + $0x218] sm:$0xff]  ;;  %v3272_v51 = vpack.c.bf16 %v1471_v48, %v1468_v47  ;;  %v3226_v48 = vpack.c.bf16 %v1398_v42, %v1395_v40 }
 0x1a9   :  { %v3208_v58 = vpack.c.bf16 %v1375_v50, %v1372_v49  ;;  %v1221_v50 = vlaneseq }
 0x1aa   :  { %3171 = vmatpush1.bf16.msra.mxu0 %v3170_v54  ;;  %v3206_v54 = vpack.c.bf16 %v1368_v46, %v1365_v44  ;;  %v1501_v44 = vld [vmem:[#allocation12 + $0x620] sm:$0xff]  ;;  %v1358_v46 = vld [vmem:[#allocation12 + $0x1a8] sm:$0xff] }
 0x1ab   :  { %3173 = vmatprep.subr.bf16.mxu0 %v3172_v55  ;;  %3267 = vmatpush1.bf16.msra.mxu1 %v3266_v59  ;;  %v1371_v55 = vld [vmem:[#allocation12 + $0x210] sm:$0xff]  ;;  %v1378_v59 = vld [vmem:[#allocation12 + $0x248] sm:$0xff] }
 0x1ac   :  { %3269 = vmatprep.subr.bf16.mxu1 %v3268_v61  ;;  %v1477_v61 = vld [vmem:[#allocation12 + $0x560] sm:$0xff]  ;;  %v3210_v2 = vpack.c.bf16 %v1374_v56, %v1371_v55  ;;  %v3212_v5 = vpack.c.bf16 %v1381_v15, %v1378_v59 }
 0x1ad   :  { %v3276_v62 = vpack.c.bf16 %v1477_v61, %v1474_v60 }
 0x1ae   :  { %3175 = vmatpush1.bf16.msra.mxu0 %v3174_v63  ;;  %v1473_v63 = vld [vmem:[#allocation12 + $0x540] sm:$0xff] }
 0x1af   :  { %3177 = vmatprep.subr.bf16.mxu0 %v3176_v26  ;;  %3271 = vmatpush1.bf16.msra.mxu1 %v3270_v3  ;;  %v1476_v26 = vld [vmem:[#allocation12 + $0x558] sm:$0xff]  ;;  %v1377_v3 = vld [vmem:[#allocation12 + $0x240] sm:$0xff] }
 0x1b0   :  { %3273 = vmatprep.subr.bf16.mxu1 %v3272_v51  ;;  %v3278_v0 = vpack.c.bf16 %v1476_v26, %v1473_v63  ;;  %v3214_v14 = vpack.c.bf16 %v1380_v4, %v1377_v3  ;;  %v4184_v51 = vshrl.u32 %v1221_v50, 7  ;;  %v1307_v26 = vld [vmem:[#allocation12 + $0x10] sm:$0xff]  ;;  %v1361_v3 = vld [vmem:[#allocation12 + $0x1c0] sm:$0xff]  ;;  %v1364_v4 = vld [vmem:[#allocation12 + $0x1d8] sm:$0xff] }
 0x1b2   :  { %3179 = vmatpush1.bf16.msra.mxu0 %v3178_v6  ;;  %v1384_v6 = vld [vmem:[#allocation12 + $0x278] sm:$0xff]  ;;  %v4187_v52 = vsub.s32 0, %v4184_v51  ;;  %v1239_v53 = vsub.s32 4, %v4184_v51  ;;  %v4193_v55 = vsub.s32 1, %v4184_v51  ;;  %v4208_v16 = vsub.s32 2, %v4184_v51 }
 0x1b3   :  { %3181 = vmatprep.subr.bf16.mxu0 %v3180_v7  ;;  %3275 = vmatpush1.bf16.msra.mxu1 %v3274_v57  ;;  %v1480_v7 = vld [vmem:[#allocation12 + $0x578] sm:$0xff]  ;;  %v3216_v18 = vpack.c.bf16 %v1387_v9, %v1384_v6  ;;  %v1313_v9 = vld [vmem:[#allocation12 + $0x40] sm:$0xff] }
 0x1b4   :  { %3277 = vmatprep.subr.bf16.mxu1 %v3276_v62  ;;  %v3280_v10 = vpack.c.bf16 %v1483_v8, %v1480_v7  ;;  %v3552_v8 = vpack.c.bf16 %v1364_v4, %v1361_v3  ;;  %v1391_v3 = vld [vmem:[#allocation12 + $0x2b0] sm:$0xff]  ;;  %v1394_v4 = vld [vmem:[#allocation12 + $0x2c8] sm:$0xff] }
 0x1b6   :  { %3183 = vmatpush1.bf16.msra.mxu0 %v3182_v12  ;;  %v1482_v12 = vld [vmem:[#allocation12 + $0x588] sm:$0xff] }
 0x1b7   :  { %3185 = vmatprep.subr.bf16.mxu0 %v3184_v13  ;;  %3279 = vmatpush1.bf16.msra.mxu1 %v3278_v0  ;;  %v3282_v13 = vpack.c.bf16 %v1482_v12, %v1479_v11  ;;  %v1310_v0 = vld [vmem:[#allocation12 + $0x28] sm:$0xff]  ;;  %v1367_v11 = vld [vmem:[#allocation12 + $0x1f0] sm:$0xff] }
 0x1b8   :  { %3281 = vmatprep.subr.bf16.mxu1 %v3280_v10  ;;  %v3550_v6 = vpack.c.bf16 %v1310_v0, %v1307_v26  ;;  %v1316_v10 = vld [vmem:[#allocation12 + $0x58] sm:$0xff]  ;;  %v1370_v12 = vld [vmem:[#allocation12 + $0x208] sm:$0xff] }
 0x1b9   :  { %v1340_v26 = vld [vmem:[#allocation12 + $0x118] sm:$0xff]  ;;  %v1510_v0 = vld [vmem:[#allocation12 + $0x668] sm:$0xff] }
 0x1ba   :  { %3187 = vmatpush1.bf16.msra.mxu0 %v3186_v19  ;;  %v1390_v19 = vld [vmem:[#allocation12 + $0x2a8] sm:$0xff] }
 0x1bb   :  { %3189 = vmatprep.subr.bf16.mxu0 %v3188_v20  ;;  %v1486_v20 = vld [vmem:[#allocation12 + $0x5a8] sm:$0xff]  ;;  %3283 = vmatpush1.bf16.msra.mxu1 %v3282_v13  ;;  %v3220_v30 = vpack.c.bf16 %v1393_v21, %v1390_v19  ;;  %v3554_v13 = vpack.c.bf16 %v1316_v10, %v1313_v9  ;;  %v1243_v19 = vsub.s32 5, %v4184_v51  ;;  %v1376_v21 = vld [vmem:[#allocation12 + $0x238] sm:$0xff]  ;;  %v1509_v9 = vld [vmem:[#allocation12 + $0x660] sm:$0xff] }
 0x1bc   :  { %v3284_v22 = vpack.c.bf16 %v1489_v1, %v1486_v20  ;;  %v1235_v20 = vsub.s32 3, %v4184_v51  ;;  %v1373_v1 = vld [vmem:[#allocation12 + $0x220] sm:$0xff]  ;;  %v1512_v10 = vld [vmem:[#allocation12 + $0x678] sm:$0xff] }
 0x1be   :  { %3191 = vmatpush1.bf16.msra.mxu0 %v3190_v24  ;;  %v1488_v24 = vld [vmem:[#allocation12 + $0x5b8] sm:$0xff]  ;;  %3285 = vmatprep.subr.bf16.mxu1 %v3284_v22 }
 0x1bf   :  { %3193 = vmatprep.subr.bf16.mxu0 %v3192_v25  ;;  %v3286_v25 = vpack.c.bf16 %v1488_v24, %v1485_v23  ;;  %v3560_v24 = vpack.c.bf16 %v1376_v21, %v1373_v1  ;;  %v1397_v1 = vld [vmem:[#allocation12 + $0x2e0] sm:$0xff]  ;;  %v1400_v21 = vld [vmem:[#allocation12 + $0x2f8] sm:$0xff] }
 0x1c1   :  { %3287 = vmatpush1.bf16.msra.mxu1 %v3286_v25  ;;  %v1325_v25 = vld [vmem:[#allocation12 + $0xa0] sm:$0xff] }
 0x1c2   :  { %3195 = vmatpush1.bf16.msra.mxu0 %v3194_v31  ;;  %v1396_v31 = vld [vmem:[#allocation12 + $0x2d8] sm:$0xff] }
 0x1c3   :  { %3197 = vmatprep.subr.bf16.mxu0 %v3196_v32  ;;  %v1492_v32 = vld [vmem:[#allocation12 + $0x5d8] sm:$0xff]  ;;  %v3224_v41 = vpack.c.bf16 %v1399_v34, %v1396_v31  ;;  %v1382_v31 = vld [vmem:[#allocation12 + $0x268] sm:$0xff] }
 0x1c4   :  { %v3288_v35 = vpack.c.bf16 %v1495_v33, %v1492_v32 }
 0x1c6   :  { %3199 = vmatpush1.bf16.msra.mxu0 %v3198_v37  ;;  %v1494_v37 = vld [vmem:[#allocation12 + $0x5e8] sm:$0xff]  ;;  %3289 = vmatprep.subr.bf16.mxu1 %v3288_v35 }
 0x1c7   :  { %3201 = vmatprep.subr.bf16.mxu0 %v3200_v38  ;;  %v3290_v38 = vpack.c.bf16 %v1494_v37, %v1491_v36 }
 0x1c9   :  { %3291 = vmatpush1.bf16.msra.mxu1 %v3290_v38  ;;  %v1497_v38 = vld [vmem:[#allocation12 + $0x600] sm:$0xff] }
 0x1ca   :  { %3203 = vmatpush1.bf16.msra.mxu0 %v3202_v43  ;;  %v1498_v43 = vld [vmem:[#allocation12 + $0x608] sm:$0xff] }
 0x1cb   :  { %3205 = vmatprep.subr.bf16.mxu0 %v3204_v45  ;;  %v1355_v45 = vld [vmem:[#allocation12 + $0x190] sm:$0xff]  ;;  %v3292_v47 = vpack.c.bf16 %v1501_v44, %v1498_v43  ;;  %v1334_v44 = vld [vmem:[#allocation12 + $0xe8] sm:$0xff] }
 0x1cc   :  { %v3548_v49 = vpack.c.bf16 %v1358_v46, %v1355_v45  ;;  %v1504_v45 = vld [vmem:[#allocation12 + $0x638] sm:$0xff]  ;;  %v1507_v46 = vld [vmem:[#allocation12 + $0x650] sm:$0xff] }
 0x1cd   :  { %3293 = vmatprep.subr.bf16.mxu1 %v3292_v47  ;;  %v1385_v47 = vld [vmem:[#allocation12 + $0x280] sm:$0xff] }
 0x1ce   :  { %3207 = vmatpush1.bf16.msra.mxu0 %v3206_v54  ;;  %v4190_v54 = vld [vmem:[#allocation10] sm:$0xff] }
 0x1cf   :  { %3209 = vmatprep.subr.bf16.mxu0 %v3208_v58  ;;  %v1224_v56 = vrot.slane %v4190_v54, %v4187_v52  ;;  %v1240_v57 = vrot.slane %v4190_v54, %v1239_v53  ;;  %v1228_v58 = vrot.slane %v4190_v54, %v4193_v55  ;;  %v1232_v23 = vrot.slane %v4190_v54, %v4208_v16 }
 0x1d0   :  { %v1244_v28 = vrot.slane %v4190_v54, %v1243_v19  ;;  %v1236_v29 = vrot.slane %v4190_v54, %v1235_v20  ;;  %v1519_v19 = vld [vmem:[#allocation12 + $0x6b0] sm:$0xff] }
 0x1d2   :  { %3211 = vmatpush1.bf16.msra.mxu0 %v3210_v2 }
 0x1d3   :  { %3213 = vmatprep.subr.bf16.mxu0 %v3212_v5 }
 0x1d6   :  { %3215 = vmatpush1.bf16.msra.mxu0 %v3214_v14  ;;  %v3556_v14 = vpack.c.bf16 %v1370_v12, %v1367_v11  ;;  %v1247_v11 = vsub.s32 6, %v4184_v51  ;;  %v1343_v12 = vld [vmem:[#allocation12 + $0x130] sm:$0xff] }
 0x1d7   :  { %3217 = vmatprep.subr.bf16.mxu0 %v3216_v18  ;;  %v1322_v18 = vld [vmem:[#allocation12 + $0x88] sm:$0xff] }
 0x1d8   :  { %v3558_v22 = vpack.c.bf16 %v1322_v18, %v1319_v17  ;;  %v1251_v17 = vsub.s32 7, %v4184_v51  ;;  %v1516_v18 = vld [vmem:[#allocation12 + $0x698] sm:$0xff] }
 0x1da   :  { %3219 = vmatpush1.bf16.msra.mxu0 %v3218_v27  ;;  %v1328_v27 = vld [vmem:[#allocation12 + $0xb8] sm:$0xff] }
 0x1db   :  { %3221 = vmatprep.subr.bf16.mxu0 %v3220_v30  ;;  %v1379_v30 = vld [vmem:[#allocation12 + $0x250] sm:$0xff]  ;;  %v3562_v34 = vpack.c.bf16 %v1328_v27, %v1325_v25  ;;  %v3304_v25 = vpack.c.bf16 %v1519_v19, %v1516_v18  ;;  %v1533_v19 = vld [vmem:[#allocation12 + $0x720] sm:$0xff] }
 0x1dc   :  { %v3564_v40 = vpack.c.bf16 %v1382_v31, %v1379_v30  ;;  %v1515_v27 = vld [vmem:[#allocation12 + $0x690] sm:$0xff]  ;;  %v1252_v30 = vrot.slane %v4190_v54, %v1251_v17  ;;  %v3576_v31 = vpack.c.bf16 %v1400_v21, %v1397_v1  ;;  %v1536_v1 = vld [vmem:[#allocation12 + $0x738] sm:$0xff] }
 0x1dd   :  { %v1415_v21 = vld [vmem:[#allocation12 + $0x370] sm:$0xff] }
 0x1de   :  { %3223 = vmatpush1.bf16.msra.mxu0 %v3222_v39  ;;  %v1500_v39 = vld [vmem:[#allocation12 + $0x618] sm:$0xff] }
 0x1df   :  { %3225 = vmatprep.subr.bf16.mxu0 %v3224_v41  ;;  %v1331_v41 = vld [vmem:[#allocation12 + $0xd0] sm:$0xff]  ;;  %v3294_v50 = vpack.c.bf16 %v1500_v39, %v1497_v38  ;;  %v1454_v39 = vld [vmem:[#allocation12 + $0x4a8] sm:$0xff] }
 0x1e0   :  { %v1451_v38 = vld [vmem:[#allocation12 + $0x490] sm:$0xff] }
 0x1e2   :  { %3227 = vmatpush1.bf16.msra.mxu0 %v3226_v48  ;;  %v1388_v48 = vld [vmem:[#allocation12 + $0x298] sm:$0xff] }
 0x1e3   :  { %3549 = vmatprep.subr.bf16.mxu0 %v3548_v49 }
 0x248   :  { %v857_v59 = vpop.f32.mrb[2].mxu0  ;;  %v999_v60 = vpop.f32.mrb[0].mxu1 }
 0x249   :  { %v4200_v61 = vadd.f32 %v1224_v56, %v857_v59  ;;  %v4202_v15 = vadd.f32 %v1240_v57, %v999_v60  ;;  %v859_v62 = vpop.f32.mrb[3].mxu0  ;;  %v1001_v63 = vpop.f32.mrb[1].mxu1  ;;  %v3566_v56 = vpack.c.bf16 %v1334_v44, %v1331_v41  ;;  %v3296_v57 = vpack.c.bf16 %v1507_v46, %v1504_v45  ;;  %v1506_v59 = vld [vmem:[#allocation12 + $0x648] sm:$0xff]  ;;  %v1337_v60 = vld [vmem:[#allocation12 + $0x100] sm:$0xff] }
 0x24a   :  { %v1282_v2 = vadd.f32 %v1228_v58, %v859_v62  ;;  %v4224_v42 = vadd.f32 %v1244_v28, %v1001_v63  ;;  %v1503_v58 = vld [vmem:[#allocation12 + $0x630] sm:$0xff]  ;;  %v3568_v63 = vpack.c.bf16 %v1388_v48, %v1385_v47  ;;  %v1518_v28 = vld [vmem:[#allocation12 + $0x6a8] sm:$0xff]  ;;  %v1521_v48 = vld [vmem:[#allocation12 + $0x6c0] sm:$0xff] }
 0x24b   :  { %v1293_v7 = vmax.f32 %v4200_v61, 0.0  ;;  %v3306_v41 = vpack.c.bf16 %v1518_v28, %v1515_v27  ;;  %v1469_v27 = vld [vmem:[#allocation12 + $0x520] sm:$0xff]  ;;  %v1472_v28 = vld [vmem:[#allocation12 + $0x538] sm:$0xff] }
 0x24c   :  { %v1294_v5 = vmax.f32 %v1282_v2, 0.0  ;;  %v1298_v62 = vmax.f32 %v4224_v42, 0.0  ;;  %v1513_v2 = vld [vmem:[#allocation12 + $0x680] sm:$0xff]  ;;  %v4249_v61 = vld [vmem:[#allocation10 + $0x8] sm:$0xf] }
 0x24e   :  { %1962 = vmatprep.mubr.f32.mxu0 %v1294_v5 }
 0x24f   :  { %1963 = vmatmul.mubr.f32.vlgmr.msra.gmra.mrb[10].mxu0 %v1293_v7 }
 0x250   :  { %3551 = vmatpush3.bf16.msra.mxu0 %v3550_v6  ;;  %2388 = vmatprep.mubr.f32.mxu0 %v1294_v5  ;;  %v3298_v5 = vpack.c.bf16 %v1506_v59, %v1503_v58  ;;  %v3570_v6 = vpack.c.bf16 %v1340_v26, %v1337_v60  ;;  %v1406_v58 = vld [vmem:[#allocation12 + $0x328] sm:$0xff]  ;;  %v1528_v59 = vld [vmem:[#allocation12 + $0x6f8] sm:$0xff]  ;;  %v1531_v60 = vld [vmem:[#allocation12 + $0x710] sm:$0xff] }
 0x251   :  { %3553 = vmatprep.subr.bf16.mxu0 %v3552_v8  ;;  %v3300_v8 = vpack.c.bf16 %v1513_v2, %v1510_v0  ;;  %v1460_v26 = vld [vmem:[#allocation12 + $0x4d8] sm:$0xff] }
 0x254   :  { %3555 = vmatpush3.bf16.msra.mxu0 %v3554_v13  ;;  %v3572_v13 = vpack.c.bf16 %v1394_v4, %v1391_v3  ;;  %v1527_v3 = vld [vmem:[#allocation12 + $0x6f0] sm:$0xff]  ;;  %v1530_v4 = vld [vmem:[#allocation12 + $0x708] sm:$0xff] }
 0x255   :  { %3557 = vmatprep.subr.bf16.mxu0 %v3556_v14  ;;  %v1346_v14 = vld [vmem:[#allocation12 + $0x148] sm:$0xff] }
 0x258   :  { %v928_v32 = vpop.f32.mrb[4].mxu0  ;;  %v4218_v33 = vpop.f32.mrb[2].mxu1  ;;  %3559 = vmatpush3.bf16.msra.mxu0 %v3558_v22  ;;  %v3302_v22 = vpack.c.bf16 %v1512_v10, %v1509_v9  ;;  %v1412_v9 = vld [vmem:[#allocation12 + $0x358] sm:$0xff]  ;;  %v1534_v10 = vld [vmem:[#allocation12 + $0x728] sm:$0xff] }
 0x259   :  { %v4220_v35 = vadd.f32 %v1232_v23, %v928_v32  ;;  %v930_v36 = vpop.f32.mrb[5].mxu0  ;;  %v4222_v37 = vpop.f32.mrb[3].mxu1  ;;  %3561 = vmatprep.subr.bf16.mxu0 %v3560_v24  ;;  %v1248_v23 = vrot.slane %v4190_v54, %v1247_v11  ;;  %v3574_v24 = vpack.c.bf16 %v1346_v14, %v1343_v12  ;;  %v1352_v32 = vld [vmem:[#allocation12 + $0x178] sm:$0xff]  ;;  %v3580_v54 = vpack.c.bf16 %v1454_v39, %v1451_v38  ;;  %v1537_v11 = vld [vmem:[#allocation12 + $0x740] sm:$0xff]  ;;  %v1463_v12 = vld [vmem:[#allocation12 + $0x4f0] sm:$0xff] }
 0x25a   :  { %v4226_v43 = vadd.f32 %v1236_v29, %v930_v36  ;;  %v1349_v29 = vld [vmem:[#allocation12 + $0x160] sm:$0xff]  ;;  %v3314_v14 = vpack.c.bf16 %v1530_v4, %v1527_v3  ;;  %v3316_v18 = vpack.c.bf16 %v1537_v11, %v1534_v10  ;;  %v1546_v38 = vld [vmem:[#allocation12 + $0x788] sm:$0xff]  ;;  %v1436_v11 = vld [vmem:[#allocation12 + $0x418] sm:$0xff] }
 0x25b   :  { %v1295_v53 = vmax.f32 %v4220_v35, 0.0  ;;  %v1525_v36 = vld [vmem:[#allocation12 + $0x6e0] sm:$0xff]  ;;  %v3578_v46 = vpack.c.bf16 %v1352_v32, %v1349_v29  ;;  %v1539_v29 = vld [vmem:[#allocation12 + $0x750] sm:$0xff]  ;;  %v1268_v32 = vrot.slane %v4249_v61, %v1235_v20 }
 0x25c   :  { %v1296_v49 = vmax.f32 %v4226_v43, 0.0  ;;  %3563 = vmatpush3.bf16.msra.mxu0 %v3562_v34  ;;  %v1522_v34 = vld [vmem:[#allocation12 + $0x6c8] sm:$0xff]  ;;  %v1549_v39 = vld [vmem:[#allocation12 + $0x7a0] sm:$0xff] }
 0x25d   :  { %3565 = vmatprep.subr.bf16.mxu0 %v3564_v40  ;;  %v3308_v47 = vpack.c.bf16 %v1525_v36, %v1522_v34  ;;  %v3592_v34 = vpack.c.bf16 %v1472_v28, %v1469_v27  ;;  %v1424_v36 = vld [vmem:[#allocation12 + $0x3b8] sm:$0xff]  ;;  %v1567_v28 = vld [vmem:[#allocation12 + $0x830] sm:$0xff] }
 0x25e   :  { %2033 = vmatprep.mubr.f32.mxu1 %v1296_v49  ;;  %v1564_v27 = vld [vmem:[#allocation12 + $0x818] sm:$0xff] }
 0x25f   :  { %2034 = vmatmul.mubr.f32.vlgmr.msra.gmra.mrb[4].mxu1 %v1295_v53 }
 0x260   :  { %3295 = vmatpush1.bf16.msra.mxu1 %v3294_v50  ;;  %2104 = vmatprep.mubr.f32.mxu1 %v1298_v62  ;;  %v1524_v50 = vld [vmem:[#allocation12 + $0x6d8] sm:$0xff] }
 0x261   :  { %3567 = vmatpush3.bf16.msra.mxu0 %v3566_v56  ;;  %3297 = vmatprep.subr.bf16.mxu1 %v3296_v57  ;;  %v1403_v57 = vld [vmem:[#allocation12 + $0x310] sm:$0xff]  ;;  %v3310_v0 = vpack.c.bf16 %v1524_v50, %v1521_v48  ;;  %v3324_v50 = vpack.c.bf16 %v1549_v39, %v1546_v38  ;;  %v1448_v38 = vld [vmem:[#allocation12 + $0x478] sm:$0xff]  ;;  %v1570_v39 = vld [vmem:[#allocation12 + $0x848] sm:$0xff] }
 0x262   :  { %3569 = vmatprep.subr.bf16.mxu0 %v3568_v63  ;;  %v1457_v63 = vld [vmem:[#allocation12 + $0x4c0] sm:$0xff]  ;;  %v3582_v2 = vpack.c.bf16 %v1406_v58, %v1403_v57  ;;  %v1548_v57 = vld [vmem:[#allocation12 + $0x798] sm:$0xff]  ;;  %v1427_v58 = vld [vmem:[#allocation12 + $0x3d0] sm:$0xff] }
 0x264   :  { %3299 = vmatpush1.bf16.msra.mxu1 %v3298_v5  ;;  %v1409_v5 = vld [vmem:[#allocation12 + $0x340] sm:$0xff] }
 0x265   :  { %3571 = vmatpush3.bf16.msra.mxu0 %v3570_v6  ;;  %3301 = vmatprep.subr.bf16.mxu1 %v3300_v8  ;;  %v3312_v6 = vpack.c.bf16 %v1531_v60, %v1528_v59  ;;  %v3584_v8 = vpack.c.bf16 %v1460_v26, %v1457_v63  ;;  %v3586_v17 = vpack.c.bf16 %v1412_v9, %v1409_v5  ;;  %v1430_v60 = vld [vmem:[#allocation12 + $0x3e8] sm:$0xff]  ;;  %v1552_v63 = vld [vmem:[#allocation12 + $0x7b8] sm:$0xff]  ;;  %v1555_v26 = vld [vmem:[#allocation12 + $0x7d0] sm:$0xff] }
 0x266   :  { %3573 = vmatprep.subr.bf16.mxu0 %v3572_v13  ;;  %v1466_v13 = vld [vmem:[#allocation12 + $0x508] sm:$0xff]  ;;  %v3598_v4 = vpack.c.bf16 %v1430_v60, %v1427_v58  ;;  %v3328_v5 = vpack.c.bf16 %v1555_v26, %v1552_v63  ;;  %v1433_v9 = vld [vmem:[#allocation12 + $0x400] sm:$0xff]  ;;  %v1576_v63 = vld [vmem:[#allocation12 + $0x878] sm:$0xff] }
 0x267   :  { %v1502_v60 = vld [vmem:[#allocation12 + $0x628] sm:$0xff]  ;;  %v1579_v26 = vld [vmem:[#allocation12 + $0x890] sm:$0xff] }
 0x268   :  { %3303 = vmatpush1.bf16.msra.mxu1 %v3302_v22  ;;  %v1070_v40 = vpop.f32.mrb[6].mxu0  ;;  %v3588_v22 = vpack.c.bf16 %v1466_v13, %v1463_v12  ;;  %v1558_v12 = vld [vmem:[#allocation12 + $0x7e8] sm:$0xff]  ;;  %v1561_v13 = vld [vmem:[#allocation12 + $0x800] sm:$0xff] }
 0x269   :  { %v4241_v44 = vadd.f32 %v1248_v23, %v1070_v40  ;;  %3575 = vmatpush3.bf16.msra.mxu0 %v3574_v24  ;;  %v1072_v45 = vpop.f32.mrb[7].mxu0  ;;  %3305 = vmatprep.subr.bf16.mxu1 %v3304_v25  ;;  %v1418_v23 = vld [vmem:[#allocation12 + $0x388] sm:$0xff]  ;;  %v1540_v24 = vld [vmem:[#allocation12 + $0x758] sm:$0xff]  ;;  %v1543_v25 = vld [vmem:[#allocation12 + $0x770] sm:$0xff] }
 0x26a   :  { %v4243_v56 = vadd.f32 %v1252_v30, %v1072_v45  ;;  %3577 = vmatprep.subr.bf16.mxu0 %v3576_v31  ;;  %v3590_v43 = vpack.c.bf16 %v1418_v23, %v1415_v21  ;;  %v1542_v30 = vld [vmem:[#allocation12 + $0x768] sm:$0xff]  ;;  %v1421_v31 = vld [vmem:[#allocation12 + $0x3a0] sm:$0xff]  ;;  %v1475_v40 = vld [vmem:[#allocation12 + $0x550] sm:$0xff] }
 0x26b   :  { %v3594_v48 = vpack.c.bf16 %v1424_v36, %v1421_v31  ;;  %v1557_v21 = vld [vmem:[#allocation12 + $0x7e0] sm:$0xff]  ;;  %v1439_v23 = vld [vmem:[#allocation12 + $0x430] sm:$0xff] }
 0x26c   :  { %3307 = vmatpush1.bf16.msra.mxu1 %v3306_v41  ;;  %v1478_v41 = vld [vmem:[#allocation12 + $0x568] sm:$0xff]  ;;  %v1563_v31 = vld [vmem:[#allocation12 + $0x810] sm:$0xff] }
 0x26d   :  { %3579 = vmatpush3.bf16.msra.mxu0 %v3578_v46  ;;  %3309 = vmatprep.subr.bf16.mxu1 %v3308_v47  ;;  %v3322_v46 = vpack.c.bf16 %v1542_v30, %v1539_v29  ;;  %v3596_v20 = vpack.c.bf16 %v1478_v41, %v1475_v40  ;;  %v3336_v30 = vpack.c.bf16 %v1567_v28, %v1564_v27  ;;  %v1573_v40 = vld [vmem:[#allocation12 + $0x860] sm:$0xff]  ;;  %v1547_v41 = vld [vmem:[#allocation12 + $0x790] sm:$0xff]  ;;  %v1588_v27 = vld [vmem:[#allocation12 + $0x8d8] sm:$0xff] }
 0x26e   :  { %3581 = vmatprep.subr.bf16.mxu0 %v3580_v54  ;;  %v1545_v54 = vld [vmem:[#allocation12 + $0x780] sm:$0xff]  ;;  %v1591_v28 = vld [vmem:[#allocation12 + $0x8f0] sm:$0xff] }
 0x26f   :  { %v3326_v3 = vpack.c.bf16 %v1548_v57, %v1545_v54  ;;  %v1569_v54 = vld [vmem:[#allocation12 + $0x840] sm:$0xff]  ;;  %v1572_v57 = vld [vmem:[#allocation12 + $0x858] sm:$0xff]  ;;  %v3352_v42 = vpack.c.bf16 %v1591_v28, %v1588_v27 }
 0x270   :  { %3311 = vmatpush1.bf16.msra.mxu1 %v3310_v0  ;;  %2389 = vmatmul.mubr.f32.vlgmr.msra.gmra.mrb[12].mxu0 %v1293_v7  ;;  %v3318_v7 = vpack.c.bf16 %v1536_v1, %v1533_v19  ;;  %v1481_v0 = vld [vmem:[#allocation12 + $0x580] sm:$0xff]  ;;  %v3602_v19 = vpack.c.bf16 %v1436_v11, %v1433_v9  ;;  %v3332_v1 = vpack.c.bf16 %v1561_v13, %v1558_v12  ;;  %v1508_v11 = vld [vmem:[#allocation12 + $0x658] sm:$0xff]  ;;  %v1582_v12 = vld [vmem:[#allocation12 + $0x8a8] sm:$0xff] }
 0x271   :  { %3583 = vmatpush3.bf16.msra.mxu0 %v3582_v2  ;;  %2458 = vmatprep.mubr.f32.mxu0 %v1296_v49  ;;  %v3320_v49 = vpack.c.bf16 %v1543_v25, %v1540_v24  ;;  %v1484_v2 = vld [vmem:[#allocation12 + $0x598] sm:$0xff]  ;;  %v1442_v25 = vld [vmem:[#allocation12 + $0x448] sm:$0xff]  ;;  %v3344_v9 = vpack.c.bf16 %v1579_v26, %v1576_v63  ;;  %v1585_v13 = vld [vmem:[#allocation12 + $0x8c0] sm:$0xff]  ;;  %v1297_v26 = vmax.f32 %v4202_v15, 0.0 }
 0x272   :  { %3313 = vmatprep.subr.bf16.mxu1 %v3312_v6  ;;  %3585 = vmatprep.subr.bf16.mxu0 %v3584_v8  ;;  %v1551_v6 = vld [vmem:[#allocation12 + $0x7b0] sm:$0xff]  ;;  %v1554_v8 = vld [vmem:[#allocation12 + $0x7c8] sm:$0xff]  ;;  %v3600_v10 = vpack.c.bf16 %v1484_v2, %v1481_v0  ;;  %v3606_v29 = vpack.c.bf16 %v1442_v25, %v1439_v23  ;;  %v1553_v0 = vld [vmem:[#allocation12 + $0x7c0] sm:$0xff] }
 0x273   :  { %v1556_v2 = vld [vmem:[#allocation12 + $0x7d8] sm:$0xff]  ;;  %v1511_v23 = vld [vmem:[#allocation12 + $0x670] sm:$0xff]  ;;  %v1514_v25 = vld [vmem:[#allocation12 + $0x688] sm:$0xff] }
 0x274   :  { %3315 = vmatpush1.bf16.msra.mxu1 %v3314_v14  ;;  %v1487_v14 = vld [vmem:[#allocation12 + $0x5b0] sm:$0xff]  ;;  %v1589_v27 = vld [vmem:[#allocation12 + $0x8e0] sm:$0xff]  ;;  %v1592_v28 = vld [vmem:[#allocation12 + $0x8f8] sm:$0xff] }
 0x275   :  { %3587 = vmatpush3.bf16.msra.mxu0 %v3586_v17  ;;  %3317 = vmatprep.subr.bf16.mxu1 %v3316_v18  ;;  %v1490_v17 = vld [vmem:[#allocation12 + $0x5c8] sm:$0xff]  ;;  %v3330_v18 = vpack.c.bf16 %v1554_v8, %v1551_v6  ;;  %v1505_v8 = vld [vmem:[#allocation12 + $0x640] sm:$0xff] }
 0x276   :  { %3589 = vmatprep.subr.bf16.mxu0 %v3588_v22  ;;  %v1560_v22 = vld [vmem:[#allocation12 + $0x7f8] sm:$0xff]  ;;  %v3604_v24 = vpack.c.bf16 %v1490_v17, %v1487_v14  ;;  %v1578_v6 = vld [vmem:[#allocation12 + $0x888] sm:$0xff]  ;;  %v1559_v14 = vld [vmem:[#allocation12 + $0x7f0] sm:$0xff] }
 0x277   :  { %v1562_v17 = vld [vmem:[#allocation12 + $0x808] sm:$0xff] }
 0x278   :  { %3319 = vmatpush1.bf16.msra.mxu1 %v3318_v7  ;;  %v4254_v45 = vpop.f32.mrb[8].mxu0  ;;  %v1493_v7 = vld [vmem:[#allocation12 + $0x5e0] sm:$0xff] }
 0x279   :  { %3591 = vmatpush3.bf16.msra.mxu0 %v3590_v43  ;;  %v1214_v47 = vpop.f32.mrb[9].mxu0  ;;  %3321 = vmatprep.subr.bf16.mxu1 %v3320_v49  ;;  %v1496_v43 = vld [vmem:[#allocation12 + $0x5f8] sm:$0xff]  ;;  %v3334_v49 = vpack.c.bf16 %v1560_v22, %v1557_v21  ;;  %v1581_v21 = vld [vmem:[#allocation12 + $0x8a0] sm:$0xff] }
 0x27a   :  { %v4256_v59 = vadd.f32 %v1268_v32, %v1214_v47  ;;  %3593 = vmatprep.subr.bf16.mxu0 %v3592_v34  ;;  %v1566_v32 = vld [vmem:[#allocation12 + $0x828] sm:$0xff]  ;;  %v1445_v34 = vld [vmem:[#allocation12 + $0x460] sm:$0xff]  ;;  %v3608_v36 = vpack.c.bf16 %v1496_v43, %v1493_v7  ;;  %v1584_v22 = vld [vmem:[#allocation12 + $0x8b8] sm:$0xff] }
 0x27b   :  { %v3338_v47 = vpack.c.bf16 %v1566_v32, %v1563_v31  ;;  %v1565_v7 = vld [vmem:[#allocation12 + $0x820] sm:$0xff]  ;;  %v1568_v43 = vld [vmem:[#allocation12 + $0x838] sm:$0xff]  ;;  %v3350_v35 = vpack.c.bf16 %v1584_v22, %v1581_v21  ;;  %v1594_v32 = vld [vmem:[#allocation12 + $0x908] sm:$0xff] }
 0x27c   :  { %3323 = vmatpush1.bf16.msra.mxu1 %v3322_v46  ;;  %v1550_v46 = vld [vmem:[#allocation12 + $0x7a8] sm:$0xff]  ;;  %v1520_v31 = vld [vmem:[#allocation12 + $0x6b8] sm:$0xff]  ;;  %v1535_v21 = vld [vmem:[#allocation12 + $0x730] sm:$0xff] }
 0x27d   :  { %3595 = vmatpush3.bf16.msra.mxu0 %v3594_v48  ;;  %3325 = vmatprep.subr.bf16.mxu1 %v3324_v50  ;;  %v3610_v48 = vpack.c.bf16 %v1448_v38, %v1445_v34  ;;  %v3340_v50 = vpack.c.bf16 %v1573_v40, %v1570_v39  ;;  %v3612_v58 = vpack.c.bf16 %v1550_v46, %v1547_v41  ;;  %v1597_v34 = vld [vmem:[#allocation12 + $0x920] sm:$0xff]  ;;  %v1574_v38 = vld [vmem:[#allocation12 + $0x868] sm:$0xff] }
 0x27e   :  { %3597 = vmatprep.subr.bf16.mxu0 %v3596_v20  ;;  %v1499_v20 = vld [vmem:[#allocation12 + $0x610] sm:$0xff]  ;;  %v3356_v41 = vpack.c.bf16 %v1597_v34, %v1594_v32  ;;  %v1593_v46 = vld [vmem:[#allocation12 + $0x900] sm:$0xff]  ;;  %v1646_v34 = vld [vmem:[#allocation12 + $0xaa8] sm:$0xff] }
 0x27f   :  { %v1643_v32 = vld [vmem:[#allocation12 + $0xa90] sm:$0xff] }
 0x280   :  { %3327 = vmatpush1.bf16.msra.mxu1 %v3326_v3  ;;  %v3342_v3 = vpack.c.bf16 %v1572_v57, %v1569_v54  ;;  %v1526_v54 = vld [vmem:[#allocation12 + $0x6e8] sm:$0xff]  ;;  %v1600_v57 = vld [vmem:[#allocation12 + $0x938] sm:$0xff] }
 0x281   :  { %3599 = vmatpush3.bf16.msra.mxu0 %v3598_v4  ;;  %3329 = vmatprep.subr.bf16.mxu1 %v3328_v5  ;;  %v3614_v4 = vpack.c.bf16 %v1502_v60, %v1499_v20  ;;  %v1575_v5 = vld [vmem:[#allocation12 + $0x870] sm:$0xff]  ;;  %v1577_v20 = vld [vmem:[#allocation12 + $0x880] sm:$0xff]  ;;  %v1580_v60 = vld [vmem:[#allocation12 + $0x898] sm:$0xff] }
 0x282   :  { %3601 = vmatprep.subr.bf16.mxu0 %v3600_v10  ;;  %v3616_v10 = vpack.c.bf16 %v1556_v2, %v1553_v0 }
 0x284   :  { %3331 = vmatpush1.bf16.msra.mxu1 %v3330_v18  ;;  %v3346_v18 = vpack.c.bf16 %v1578_v6, %v1575_v5  ;;  %v1529_v5 = vld [vmem:[#allocation12 + $0x700] sm:$0xff]  ;;  %v1300_v6 = vmax.f32 %v4243_v56, 0.0 }
 0x285   :  { %3603 = vmatpush3.bf16.msra.mxu0 %v3602_v19  ;;  %3333 = vmatprep.subr.bf16.mxu1 %v3332_v1  ;;  %v3618_v19 = vpack.c.bf16 %v1508_v11, %v1505_v8  ;;  %v3348_v1 = vpack.c.bf16 %v1585_v13, %v1582_v12  ;;  %v3632_v8 = vpack.c.bf16 %v1580_v60, %v1577_v20  ;;  %v1609_v11 = vld [vmem:[#allocation12 + $0x980] sm:$0xff]  ;;  %v1583_v12 = vld [vmem:[#allocation12 + $0x8b0] sm:$0xff]  ;;  %v1586_v13 = vld [vmem:[#allocation12 + $0x8c8] sm:$0xff] }
 0x286   :  { %3605 = vmatprep.subr.bf16.mxu0 %v3604_v24  ;;  %v3620_v24 = vpack.c.bf16 %v1562_v17, %v1559_v14  ;;  %v3636_v22 = vpack.c.bf16 %v1586_v13, %v1583_v12 }
 0x288   :  { %3335 = vmatpush1.bf16.msra.mxu1 %v3334_v49  ;;  %v1590_v49 = vld [vmem:[#allocation12 + $0x8e8] sm:$0xff] }
 0x289   :  { %3607 = vmatpush3.bf16.msra.mxu0 %v3606_v29  ;;  %3337 = vmatprep.subr.bf16.mxu1 %v3336_v30  ;;  %v1517_v29 = vld [vmem:[#allocation12 + $0x6a0] sm:$0xff]  ;;  %v3624_v30 = vpack.c.bf16 %v1568_v43, %v1565_v7 }
 0x28a   :  { %3609 = vmatprep.subr.bf16.mxu0 %v3608_v36  ;;  %v1571_v36 = vld [vmem:[#allocation12 + $0x850] sm:$0xff]  ;;  %v3626_v40 = vpack.c.bf16 %v1520_v31, %v1517_v29  ;;  %v1544_v29 = vld [vmem:[#allocation12 + $0x778] sm:$0xff]  ;;  %v1621_v31 = vld [vmem:[#allocation12 + $0x9e0] sm:$0xff] }
 0x28c   :  { %3339 = vmatpush1.bf16.msra.mxu1 %v3338_v47  ;;  %v1596_v47 = vld [vmem:[#allocation12 + $0x918] sm:$0xff] }
 0x28d   :  { %3611 = vmatpush3.bf16.msra.mxu0 %v3610_v48  ;;  %3341 = vmatprep.subr.bf16.mxu1 %v3340_v50  ;;  %v1523_v48 = vld [vmem:[#allocation12 + $0x6d0] sm:$0xff]  ;;  %v3628_v50 = vpack.c.bf16 %v1574_v38, %v1571_v36  ;;  %v3358_v63 = vpack.c.bf16 %v1596_v47, %v1593_v46  ;;  %v3644_v46 = vpack.c.bf16 %v1646_v34, %v1643_v32  ;;  %v1644_v32 = vld [vmem:[#allocation12 + $0xa98] sm:$0xff] }
 0x28e   :  { %3613 = vmatprep.subr.bf16.mxu0 %v3612_v58  ;;  %v1603_v58 = vld [vmem:[#allocation12 + $0x950] sm:$0xff]  ;;  %v3630_v0 = vpack.c.bf16 %v1526_v54, %v1523_v48  ;;  %v1598_v48 = vld [vmem:[#allocation12 + $0x928] sm:$0xff] }
 0x28f   :  { %v3360_v2 = vpack.c.bf16 %v1603_v58, %v1600_v57  ;;  %v1595_v47 = vld [vmem:[#allocation12 + $0x910] sm:$0xff]  ;;  %v1649_v57 = vld [vmem:[#allocation12 + $0xac0] sm:$0xff]  ;;  %v1652_v58 = vld [vmem:[#allocation12 + $0xad8] sm:$0xff] }
 0x290   :  { %3343 = vmatpush1.bf16.msra.mxu1 %v3342_v3  ;;  %2459 = vmatmul.mubr.f32.vlgmr.msra.gmra.mrb[14].mxu0 %v1295_v53  ;;  %v3622_v53 = vpack.c.bf16 %v1514_v25, %v1511_v23  ;;  %v1599_v3 = vld [vmem:[#allocation12 + $0x930] sm:$0xff]  ;;  %v1538_v23 = vld [vmem:[#allocation12 + $0x748] sm:$0xff]  ;;  %v3646_v60 = vpack.c.bf16 %v1598_v48, %v1595_v47 }
 0x291   :  { %3615 = vmatpush3.bf16.msra.mxu0 %v3614_v4  ;;  %2528 = vmatprep.mubr.f32.mxu0 %v1298_v62  ;;  %v1587_v62 = vld [vmem:[#allocation12 + $0x8d0] sm:$0xff]  ;;  %v1602_v4 = vld [vmem:[#allocation12 + $0x948] sm:$0xff]  ;;  %v3638_v43 = vpack.c.bf16 %v1538_v23, %v1535_v21 }
 0x292   :  { %3345 = vmatprep.subr.bf16.mxu1 %v3344_v9  ;;  %3617 = vmatprep.subr.bf16.mxu0 %v3616_v10  ;;  %v3354_v39 = vpack.c.bf16 %v1590_v49, %v1587_v62  ;;  %v1532_v9 = vld [vmem:[#allocation12 + $0x718] sm:$0xff]  ;;  %v1606_v10 = vld [vmem:[#allocation12 + $0x968] sm:$0xff]  ;;  %v3362_v14 = vpack.c.bf16 %v1602_v4, %v1599_v3  ;;  %v1615_v25 = vld [vmem:[#allocation12 + $0x9b0] sm:$0xff]  ;;  %v3640_v49 = vpack.c.bf16 %v1592_v28, %v1589_v27 }
 0x293   :  { %v3634_v17 = vpack.c.bf16 %v1532_v9, %v1529_v5  ;;  %v1541_v62 = vld [vmem:[#allocation12 + $0x760] sm:$0xff]  ;;  %v1627_v54 = vld [vmem:[#allocation12 + $0xa10] sm:$0xff]  ;;  %v3648_v4 = vpack.c.bf16 %v1652_v58, %v1649_v57  ;;  %v1604_v5 = vld [vmem:[#allocation12 + $0x958] sm:$0xff] }
 0x294   :  { %3347 = vmatpush1.bf16.msra.mxu1 %v3346_v18  ;;  %v3364_v18 = vpack.c.bf16 %v1609_v11, %v1606_v10  ;;  %v3642_v38 = vpack.c.bf16 %v1544_v29, %v1541_v62  ;;  %v1633_v9 = vld [vmem:[#allocation12 + $0xa40] sm:$0xff]  ;;  %v1655_v10 = vld [vmem:[#allocation12 + $0xaf0] sm:$0xff]  ;;  %v1658_v11 = vld [vmem:[#allocation12 + $0xb08] sm:$0xff] }
 0x295   :  { %3619 = vmatpush3.bf16.msra.mxu0 %v3618_v19  ;;  %3349 = vmatprep.subr.bf16.mxu1 %v3348_v1  ;;  %v1605_v19 = vld [vmem:[#allocation12 + $0x960] sm:$0xff]  ;;  %v1608_v1 = vld [vmem:[#allocation12 + $0x978] sm:$0xff]  ;;  %v1610_v21 = vld [vmem:[#allocation12 + $0x988] sm:$0xff] }
 0x296   :  { %3621 = vmatprep.subr.bf16.mxu0 %v3620_v24  ;;  %v1612_v24 = vld [vmem:[#allocation12 + $0x998] sm:$0xff]  ;;  %v3366_v7 = vpack.c.bf16 %v1608_v1, %v1605_v19  ;;  %v1607_v19 = vld [vmem:[#allocation12 + $0x970] sm:$0xff]  ;;  %v3652_v1 = vpack.c.bf16 %v1658_v11, %v1655_v10  ;;  %v1638_v27 = vld [vmem:[#allocation12 + $0xa68] sm:$0xff] }
 0x297   :  { %v1639_v23 = vld [vmem:[#allocation12 + $0xa70] sm:$0xff]  ;;  %v1613_v28 = vld [vmem:[#allocation12 + $0x9a0] sm:$0xff]  ;;  %v1670_v62 = vld [vmem:[#allocation12 + $0xb68] sm:$0xff] }
 0x298   :  { %3351 = vmatpush1.bf16.msra.mxu1 %v3350_v35  ;;  %v3368_v35 = vpack.c.bf16 %v1615_v25, %v1612_v24  ;;  %v1661_v24 = vld [vmem:[#allocation12 + $0xb20] sm:$0xff]  ;;  %v1664_v25 = vld [vmem:[#allocation12 + $0xb38] sm:$0xff]  ;;  %v1619_v34 = vld [vmem:[#allocation12 + $0x9d0] sm:$0xff] }
 0x299   :  { %3623 = vmatpush3.bf16.msra.mxu0 %v3622_v53  ;;  %3353 = vmatprep.subr.bf16.mxu1 %v3352_v42  ;;  %v1611_v53 = vld [vmem:[#allocation12 + $0x990] sm:$0xff]  ;;  %v1614_v42 = vld [vmem:[#allocation12 + $0x9a8] sm:$0xff]  ;;  %v1625_v58 = vld [vmem:[#allocation12 + $0xa00] sm:$0xff] }
 0x29a   :  { %3625 = vmatprep.subr.bf16.mxu0 %v3624_v30  ;;  %v1618_v30 = vld [vmem:[#allocation12 + $0x9c8] sm:$0xff]  ;;  %v3370_v36 = vpack.c.bf16 %v1614_v42, %v1611_v53  ;;  %v1645_v53 = vld [vmem:[#allocation12 + $0xaa0] sm:$0xff]  ;;  %v1667_v42 = vld [vmem:[#allocation12 + $0xb50] sm:$0xff] }
 0x29b   :  { %v1650_v57 = vld [vmem:[#allocation12 + $0xac8] sm:$0xff]  ;;  %v1656_v10 = vld [vmem:[#allocation12 + $0xaf8] sm:$0xff]  ;;  %v1631_v11 = vld [vmem:[#allocation12 + $0xa30] sm:$0xff] }
 0x29c   :  { %3355 = vmatpush1.bf16.msra.mxu1 %v3354_v39  ;;  %v3372_v39 = vpack.c.bf16 %v1621_v31, %v1618_v30  ;;  %v1641_v31 = vld [vmem:[#allocation12 + $0xa80] sm:$0xff] }
 0x29d   :  { %3627 = vmatpush3.bf16.msra.mxu0 %v3626_v40  ;;  %3357 = vmatprep.subr.bf16.mxu1 %v3356_v41  ;;  %v1617_v40 = vld [vmem:[#allocation12 + $0x9c0] sm:$0xff]  ;;  %v1620_v41 = vld [vmem:[#allocation12 + $0x9d8] sm:$0xff]  ;;  %v3390_v47 = vpack.c.bf16 %v1644_v32, %v1641_v31 }
 0x29e   :  { %3629 = vmatprep.subr.bf16.mxu0 %v3628_v50  ;;  %v1624_v50 = vld [vmem:[#allocation12 + $0x9f8] sm:$0xff]  ;;  %v3374_v20 = vpack.c.bf16 %v1620_v41, %v1617_v40  ;;  %v1651_v40 = vld [vmem:[#allocation12 + $0xad0] sm:$0xff]  ;;  %v1673_v41 = vld [vmem:[#allocation12 + $0xb80] sm:$0xff] }
 0x29f   :  { %2105 = vmatmul.mubr.f32.vlgmr.msra.gmra.mrb[4].mxu1 %v1297_v26  ;;  %v3376_v3 = vpack.c.bf16 %v1627_v54, %v1624_v50  ;;  %v1647_v54 = vld [vmem:[#allocation12 + $0xab0] sm:$0xff]  ;;  %v1672_v31 = vld [vmem:[#allocation12 + $0xb78] sm:$0xff] }
 0x2a0   :  { %3359 = vmatpush1.bf16.msra.mxu1 %v3358_v63  ;;  %2175 = vmatprep.mubr.f32.mxu1 %v1300_v6  ;;  %v1623_v63 = vld [vmem:[#allocation12 + $0x9f0] sm:$0xff] }
 0x2a1   :  { %3631 = vmatpush3.bf16.msra.mxu0 %v3630_v0  ;;  %3361 = vmatprep.subr.bf16.mxu1 %v3360_v2  ;;  %v1626_v0 = vld [vmem:[#allocation12 + $0xa08] sm:$0xff]  ;;  %v1601_v2 = vld [vmem:[#allocation12 + $0x940] sm:$0xff] }
 0x2a2   :  { %3633 = vmatprep.subr.bf16.mxu0 %v3632_v8  ;;  %v1630_v8 = vld [vmem:[#allocation12 + $0xa28] sm:$0xff]  ;;  %v3378_v12 = vpack.c.bf16 %v1626_v0, %v1623_v63  ;;  %v3650_v13 = vpack.c.bf16 %v1604_v5, %v1601_v2  ;;  %v1657_v0 = vld [vmem:[#allocation12 + $0xb00] sm:$0xff]  ;;  %v1679_v2 = vld [vmem:[#allocation12 + $0xbb0] sm:$0xff] }
 0x2a3   :  { %v1654_v63 = vld [vmem:[#allocation12 + $0xae8] sm:$0xff] }
 0x2a4   :  { %3363 = vmatpush1.bf16.msra.mxu1 %v3362_v14  ;;  %v3380_v14 = vpack.c.bf16 %v1633_v9, %v1630_v8  ;;  %v3396_v8 = vpack.c.bf16 %v1657_v0, %v1654_v63  ;;  %v1653_v9 = vld [vmem:[#allocation12 + $0xae0] sm:$0xff]  ;;  %v1754_v63 = vld [vmem:[#allocation12 + $0xe08] sm:$0xff] }
 0x2a5   :  { %3635 = vmatpush3.bf16.msra.mxu0 %v3634_v17  ;;  %3365 = vmatprep.subr.bf16.mxu1 %v3364_v18  ;;  %v1629_v17 = vld [vmem:[#allocation12 + $0xa20] sm:$0xff]  ;;  %v1632_v18 = vld [vmem:[#allocation12 + $0xa38] sm:$0xff] }
 0x2a6   :  { %3637 = vmatprep.subr.bf16.mxu0 %v3636_v22  ;;  %v1636_v22 = vld [vmem:[#allocation12 + $0xa58] sm:$0xff]  ;;  %v3382_v15 = vpack.c.bf16 %v1632_v18, %v1629_v17  ;;  %v1663_v17 = vld [vmem:[#allocation12 + $0xb30] sm:$0xff]  ;;  %v1685_v18 = vld [vmem:[#allocation12 + $0xbe0] sm:$0xff] }
 0x2a7   :  { %v3384_v56 = vpack.c.bf16 %v1639_v23, %v1636_v22  ;;  %v1659_v23 = vld [vmem:[#allocation12 + $0xb10] sm:$0xff] }
 0x2a8   :  { %3367 = vmatpush1.bf16.msra.mxu1 %v3366_v7  ;;  %v3656_v7 = vpack.c.bf16 %v1664_v25, %v1661_v24  ;;  %v1662_v24 = vld [vmem:[#allocation12 + $0xb28] sm:$0xff]  ;;  %v1637_v25 = vld [vmem:[#allocation12 + $0xa60] sm:$0xff] }
 0x2a9   :  { %3639 = vmatpush3.bf16.msra.mxu0 %v3638_v43  ;;  %3369 = vmatprep.subr.bf16.mxu1 %v3368_v35  ;;  %v1616_v43 = vld [vmem:[#allocation12 + $0x9b8] sm:$0xff]  ;;  %v1642_v35 = vld [vmem:[#allocation12 + $0xa88] sm:$0xff] }
 0x2aa   :  { %3641 = vmatprep.subr.bf16.mxu0 %v3640_v49  ;;  %v3658_v29 = vpack.c.bf16 %v1616_v43, %v1613_v28  ;;  %v3388_v30 = vpack.c.bf16 %v1645_v53, %v1642_v35  ;;  %v1739_v28 = vld [vmem:[#allocation12 + $0xd90] sm:$0xff]  ;;  %v3402_v43 = vpack.c.bf16 %v1662_v24, %v1659_v23  ;;  %v1712_v24 = vld [vmem:[#allocation12 + $0xcb8] sm:$0xff] }
 0x2ac   :  { %3371 = vmatpush1.bf16.msra.mxu1 %v3370_v36  ;;  %v3660_v36 = vpack.c.bf16 %v1670_v62, %v1667_v42  ;;  %v1665_v42 = vld [vmem:[#allocation12 + $0xb40] sm:$0xff]  ;;  %v1668_v62 = vld [vmem:[#allocation12 + $0xb58] sm:$0xff] }
 0x2ad   :  { %3643 = vmatpush3.bf16.msra.mxu0 %v3642_v38  ;;  %3373 = vmatprep.subr.bf16.mxu1 %v3372_v39  ;;  %v1622_v38 = vld [vmem:[#allocation12 + $0x9e8] sm:$0xff]  ;;  %v1648_v39 = vld [vmem:[#allocation12 + $0xab8] sm:$0xff] }
 0x2ae   :  { %3645 = vmatprep.subr.bf16.mxu0 %v3644_v46  ;;  %v1676_v46 = vld [vmem:[#allocation12 + $0xb98] sm:$0xff]  ;;  %v3662_v48 = vpack.c.bf16 %v1622_v38, %v1619_v34  ;;  %v3392_v50 = vpack.c.bf16 %v1651_v40, %v1648_v39  ;;  %v1675_v34 = vld [vmem:[#allocation12 + $0xb90] sm:$0xff]  ;;  %v3406_v39 = vpack.c.bf16 %v1668_v62, %v1665_v42  ;;  %v1718_v42 = vld [vmem:[#allocation12 + $0xce8] sm:$0xff] }
 0x2af   :  { %v1748_v38 = vld [vmem:[#allocation12 + $0xdd8] sm:$0xff] }
 0x2b0   :  { %3375 = vmatpush1.bf16.msra.mxu1 %v3374_v20  ;;  %2529 = vmatmul.mubr.f32.vlgmr.msra.gmra.mrb[16].mxu0 %v1297_v26  ;;  %v3654_v26 = vpack.c.bf16 %v1610_v21, %v1607_v19  ;;  %v3664_v20 = vpack.c.bf16 %v1676_v46, %v1673_v41  ;;  %v1688_v19 = vld [vmem:[#allocation12 + $0xbf8] sm:$0xff]  ;;  %v1671_v41 = vld [vmem:[#allocation12 + $0xb70] sm:$0xff]  ;;  %v1674_v46 = vld [vmem:[#allocation12 + $0xb88] sm:$0xff] }
 0x2b1   :  { %3647 = vmatpush3.bf16.msra.mxu0 %v3646_v60  ;;  %2598 = vmatprep.mubr.f32.mxu0 %v1300_v6  ;;  %v1635_v6 = vld [vmem:[#allocation12 + $0xa50] sm:$0xff]  ;;  %v1628_v60 = vld [vmem:[#allocation12 + $0xa18] sm:$0xff]  ;;  %v3410_v0 = vpack.c.bf16 %v1674_v46, %v1671_v41 }
 0x2b2   :  { %3377 = vmatprep.subr.bf16.mxu1 %v3376_v3  ;;  %3649 = vmatprep.subr.bf16.mxu0 %v3648_v4  ;;  %v3386_v49 = vpack.c.bf16 %v1638_v27, %v1635_v6  ;;  %v1682_v3 = vld [vmem:[#allocation12 + $0xbc8] sm:$0xff]  ;;  %v3394_v4 = vpack.c.bf16 %v1650_v57, %v1647_v54  ;;  %v3666_v5 = vpack.c.bf16 %v1628_v60, %v1625_v58  ;;  %v1669_v6 = vld [vmem:[#allocation12 + $0xb60] sm:$0xff]  ;;  %v1700_v57 = vld [vmem:[#allocation12 + $0xc58] sm:$0xff] }
 0x2b3   :  { %v1260_v27 = vrot.slane %v4249_v61, %v4193_v55  ;;  %v1678_v58 = vld [vmem:[#allocation12 + $0xba8] sm:$0xff]  ;;  %v1751_v60 = vld [vmem:[#allocation12 + $0xdf0] sm:$0xff]  ;;  %v1696_v62 = vld [vmem:[#allocation12 + $0xc38] sm:$0xff] }
 0x2b4   :  { %3379 = vmatpush1.bf16.msra.mxu1 %v3378_v12  ;;  %v3668_v12 = vpack.c.bf16 %v1682_v3, %v1679_v2  ;;  %v1724_v46 = vld [vmem:[#allocation12 + $0xd18] sm:$0xff] }
 0x2b5   :  { %3651 = vmatpush3.bf16.msra.mxu0 %v3650_v13  ;;  %3381 = vmatprep.subr.bf16.mxu1 %v3380_v14  ;;  %v1634_v13 = vld [vmem:[#allocation12 + $0xa48] sm:$0xff]  ;;  %v1660_v14 = vld [vmem:[#allocation12 + $0xb18] sm:$0xff]  ;;  %v4275_v32 = vadd.f32 %v1260_v27, %v4222_v37  ;;  %v1681_v37 = vld [vmem:[#allocation12 + $0xbc0] sm:$0xff] }
 0x2b6   :  { %3653 = vmatprep.subr.bf16.mxu0 %v3652_v1  ;;  %v3398_v1 = vpack.c.bf16 %v1656_v10, %v1653_v9  ;;  %v3670_v21 = vpack.c.bf16 %v1634_v13, %v1631_v11  ;;  %v3400_v22 = vpack.c.bf16 %v1663_v17, %v1660_v14  ;;  %v3412_v3 = vpack.c.bf16 %v1681_v37, %v1678_v58  ;;  %v1706_v10 = vld [vmem:[#allocation12 + $0xc88] sm:$0xff]  ;;  %v1684_v11 = vld [vmem:[#allocation12 + $0xbd8] sm:$0xff]  ;;  %v1757_v13 = vld [vmem:[#allocation12 + $0xe20] sm:$0xff] }
 0x2b7   :  { %v3684_v9 = vpack.c.bf16 %v1754_v63, %v1751_v60  ;;  %v1760_v14 = vld [vmem:[#allocation12 + $0xe38] sm:$0xff]  ;;  %v1701_v63 = vld [vmem:[#allocation12 + $0xc60] sm:$0xff] }
 0x2b8   :  { %3383 = vmatpush1.bf16.msra.mxu1 %v3382_v15  ;;  %v3672_v15 = vpack.c.bf16 %v1688_v19, %v1685_v18  ;;  %v3688_v23 = vpack.c.bf16 %v1760_v14, %v1757_v13  ;;  %v1256_v13 = vrot.slane %v4249_v61, %v4187_v52 }
 0x2b9   :  { %3655 = vmatpush3.bf16.msra.mxu0 %v3654_v26  ;;  %3385 = vmatprep.subr.bf16.mxu1 %v3384_v56  ;;  %v1640_v26 = vld [vmem:[#allocation12 + $0xa78] sm:$0xff]  ;;  %v1666_v56 = vld [vmem:[#allocation12 + $0xb48] sm:$0xff] }
 0x2ba   :  { %3657 = vmatprep.subr.bf16.mxu0 %v3656_v7  ;;  %v1742_v7 = vld [vmem:[#allocation12 + $0xda8] sm:$0xff]  ;;  %v3674_v35 = vpack.c.bf16 %v1640_v26, %v1637_v25  ;;  %v3404_v53 = vpack.c.bf16 %v1669_v6, %v1666_v56  ;;  %v1763_v26 = vld [vmem:[#allocation12 + $0xe50] sm:$0xff] }
 0x2bb   :  { %v1690_v25 = vld [vmem:[#allocation12 + $0xc08] sm:$0xff] }
 0x2bc   :  { %3387 = vmatpush1.bf16.msra.mxu1 %v3386_v49  ;;  %v3676_v49 = vpack.c.bf16 %v1742_v7, %v1739_v28  ;;  %v1766_v56 = vld [vmem:[#allocation12 + $0xe68] sm:$0xff]  ;;  %v1689_v7 = vld [vmem:[#allocation12 + $0xc00] sm:$0xff] }
 0x2bd   :  { %3659 = vmatpush3.bf16.msra.mxu0 %v3658_v29  ;;  %3389 = vmatprep.subr.bf16.mxu1 %v3388_v30  ;;  %v1691_v29 = vld [vmem:[#allocation12 + $0xc10] sm:$0xff]  ;;  %v1694_v30 = vld [vmem:[#allocation12 + $0xc28] sm:$0xff] }
 0x2be   :  { %3661 = vmatprep.subr.bf16.mxu0 %v3660_v36  ;;  %v1745_v36 = vld [vmem:[#allocation12 + $0xdc0] sm:$0xff]  ;;  %v3678_v40 = vpack.c.bf16 %v1694_v30, %v1691_v29  ;;  %v1772_v30 = vld [vmem:[#allocation12 + $0xe98] sm:$0xff] }
 0x2bf   :  { %v3680_v54 = vpack.c.bf16 %v1748_v38, %v1745_v36  ;;  %v1769_v29 = vld [vmem:[#allocation12 + $0xe80] sm:$0xff]  ;;  %v1695_v38 = vld [vmem:[#allocation12 + $0xc30] sm:$0xff] }
 0x2c0   :  { %3391 = vmatpush1.bf16.msra.mxu1 %v3390_v47  ;;  %v1697_v47 = vld [vmem:[#allocation12 + $0xc40] sm:$0xff]  ;;  %v3696_v41 = vpack.c.bf16 %v1772_v30, %v1769_v29 }
 0x2c1   :  { %3663 = vmatpush3.bf16.msra.mxu0 %v3662_v48  ;;  %3393 = vmatprep.subr.bf16.mxu1 %v3392_v50  ;;  %v1299_v48 = vmax.f32 %v4241_v44, 0.0  ;;  %v3408_v50 = vpack.c.bf16 %v1675_v34, %v1672_v31  ;;  %v3682_v2 = vpack.c.bf16 %v1700_v57, %v1697_v47  ;;  %v1702_v47 = vld [vmem:[#allocation12 + $0xc68] sm:$0xff]  ;;  %v1711_v44 = vld [vmem:[#allocation12 + $0xcb0] sm:$0xff] }
 0x2c2   :  { %3665 = vmatprep.subr.bf16.mxu0 %v3664_v20  ;;  %v1302_v20 = vmax.f32 %v4275_v32, 0.0  ;;  %v1778_v57 = vld [vmem:[#allocation12 + $0xec8] sm:$0xff] }
 0x2c4   :  { %3395 = vmatpush1.bf16.msra.mxu1 %v3394_v4  ;;  %v1677_v4 = vld [vmem:[#allocation12 + $0xba0] sm:$0xff] }
 0x2c5   :  { %3667 = vmatpush3.bf16.msra.mxu0 %v3666_v5  ;;  %3397 = vmatprep.subr.bf16.mxu1 %v3396_v8  ;;  %v1680_v5 = vld [vmem:[#allocation12 + $0xbb8] sm:$0xff]  ;;  %v1703_v8 = vld [vmem:[#allocation12 + $0xc70] sm:$0xff] }
 0x2c6   :  { %3669 = vmatprep.subr.bf16.mxu0 %v3668_v12  ;;  %v1687_v12 = vld [vmem:[#allocation12 + $0xbf0] sm:$0xff]  ;;  %v3414_v17 = vpack.c.bf16 %v1680_v5, %v1677_v4  ;;  %v3686_v18 = vpack.c.bf16 %v1706_v10, %v1703_v8  ;;  %v1730_v4 = vld [vmem:[#allocation12 + $0xd48] sm:$0xff]  ;;  %v1708_v5 = vld [vmem:[#allocation12 + $0xc98] sm:$0xff] }
 0x2c7   :  { %v3416_v19 = vpack.c.bf16 %v1687_v12, %v1684_v11  ;;  %v1784_v8 = vld [vmem:[#allocation12 + $0xef8] sm:$0xff]  ;;  %v1707_v10 = vld [vmem:[#allocation12 + $0xc90] sm:$0xff]  ;;  %v1710_v11 = vld [vmem:[#allocation12 + $0xca8] sm:$0xff] }
 0x2c8   :  { %3399 = vmatpush1.bf16.msra.mxu1 %v3398_v1  ;;  %v1683_v1 = vld [vmem:[#allocation12 + $0xbd0] sm:$0xff]  ;;  %v1733_v12 = vld [vmem:[#allocation12 + $0xd60] sm:$0xff] }
 0x2c9   :  { %3671 = vmatpush3.bf16.msra.mxu0 %v3670_v21  ;;  %3401 = vmatprep.subr.bf16.mxu1 %v3400_v22  ;;  %v1686_v21 = vld [vmem:[#allocation12 + $0xbe8] sm:$0xff]  ;;  %v1709_v22 = vld [vmem:[#allocation12 + $0xca0] sm:$0xff] }
 0x2ca   :  { %3673 = vmatprep.subr.bf16.mxu0 %v3672_v15  ;;  %v1693_v15 = vld [vmem:[#allocation12 + $0xc20] sm:$0xff]  ;;  %v3418_v6 = vpack.c.bf16 %v1686_v21, %v1683_v1  ;;  %v3690_v27 = vpack.c.bf16 %v1712_v24, %v1709_v22  ;;  %v1835_v1 = vld [vmem:[#allocation12 + $0x1090] sm:$0xff]  ;;  %v1838_v21 = vld [vmem:[#allocation12 + $0x10a8] sm:$0xff]  ;;  %v3434_v22 = vpack.c.bf16 %v1710_v11, %v1707_v10 }
 0x2cb   :  { %v3420_v28 = vpack.c.bf16 %v1693_v15, %v1690_v25  ;;  %v1713_v25 = vld [vmem:[#allocation12 + $0xcc0] sm:$0xff]  ;;  %v1716_v15 = vld [vmem:[#allocation12 + $0xcd8] sm:$0xff]  ;;  %v3708_v61 = vpack.c.bf16 %v1838_v21, %v1835_v1  ;;  %v1859_v11 = vld [vmem:[#allocation12 + $0x1150] sm:$0xff] }
 0x2cc   :  { %3403 = vmatpush1.bf16.msra.mxu1 %v3402_v43  ;;  %v1692_v43 = vld [vmem:[#allocation12 + $0xc18] sm:$0xff]  ;;  %v1741_v10 = vld [vmem:[#allocation12 + $0xda0] sm:$0xff]  ;;  %v1811_v1 = vld [vmem:[#allocation12 + $0xfd0] sm:$0xff] }
 0x2cd   :  { %3675 = vmatpush3.bf16.msra.mxu0 %v3674_v35  ;;  %3405 = vmatprep.subr.bf16.mxu1 %v3404_v53  ;;  %v1715_v35 = vld [vmem:[#allocation12 + $0xcd0] sm:$0xff]  ;;  %v3692_v53 = vpack.c.bf16 %v1766_v56, %v1763_v26  ;;  %v3422_v31 = vpack.c.bf16 %v1692_v43, %v1689_v7  ;;  %v4290_v26 = vadd.f32 %v1256_v13, %v4218_v33  ;;  %v1841_v7 = vld [vmem:[#allocation12 + $0x10c0] sm:$0xff]  ;;  %v1844_v43 = vld [vmem:[#allocation12 + $0x10d8] sm:$0xff] }
 0x2ce   :  { %3677 = vmatprep.subr.bf16.mxu0 %v3676_v49  ;;  %v1699_v49 = vld [vmem:[#allocation12 + $0xc50] sm:$0xff]  ;;  %v3694_v34 = vpack.c.bf16 %v1718_v42, %v1715_v35  ;;  %v3438_v35 = vpack.c.bf16 %v1716_v15, %v1713_v25  ;;  %v3712_v30 = vpack.c.bf16 %v1844_v43, %v1841_v7  ;;  %v1865_v25 = vld [vmem:[#allocation12 + $0x1180] sm:$0xff]  ;;  %v1868_v15 = vld [vmem:[#allocation12 + $0x1198] sm:$0xff] }
 0x2cf   :  { %v3424_v36 = vpack.c.bf16 %v1699_v49, %v1696_v62  ;;  %v1787_v56 = vld [vmem:[#allocation12 + $0xf10] sm:$0xff]  ;;  %v1722_v62 = vld [vmem:[#allocation12 + $0xd08] sm:$0xff]  ;;  %v1793_v49 = vld [vmem:[#allocation12 + $0xf40] sm:$0xff]  ;;  %v1301_v29 = vmax.f32 %v4290_v26, 0.0  ;;  %v3728_v43 = vpack.c.bf16 %v1868_v15, %v1865_v25 }
 0x2d0   :  { %3407 = vmatpush1.bf16.msra.mxu1 %v3406_v39  ;;  %2599 = vmatmul.mubr.f32.vlgmr.msra.gmra.mrb[18].mxu0 %v1299_v48  ;;  %v1698_v39 = vld [vmem:[#allocation12 + $0xc48] sm:$0xff]  ;;  %v1719_v42 = vld [vmem:[#allocation12 + $0xcf0] sm:$0xff]  ;;  %v1817_v7 = vld [vmem:[#allocation12 + $0x1000] sm:$0xff] }
 0x2d1   :  { %3679 = vmatpush3.bf16.msra.mxu0 %v3678_v40  ;;  %2668 = vmatprep.mubr.f32.mxu0 %v1302_v20  ;;  %v1721_v40 = vld [vmem:[#allocation12 + $0xd00] sm:$0xff]  ;;  %v3426_v58 = vpack.c.bf16 %v1698_v39, %v1695_v38  ;;  %v1304_v38 = vmax.f32 %v4256_v59, 0.0  ;;  %v1847_v39 = vld [vmem:[#allocation12 + $0x10f0] sm:$0xff]  ;;  %v1776_v25 = vld [vmem:[#allocation12 + $0xeb8] sm:$0xff] }
 0x2d2   :  { %3409 = vmatprep.subr.bf16.mxu1 %v3408_v50  ;;  %3681 = vmatprep.subr.bf16.mxu0 %v3680_v54  ;;  %v1705_v50 = vld [vmem:[#allocation12 + $0xc80] sm:$0xff]  ;;  %v1775_v54 = vld [vmem:[#allocation12 + $0xeb0] sm:$0xff]  ;;  %v3698_v37 = vpack.c.bf16 %v1724_v46, %v1721_v40  ;;  %v1850_v40 = vld [vmem:[#allocation12 + $0x1108] sm:$0xff] }
 0x2d3   :  { %v3428_v60 = vpack.c.bf16 %v1705_v50, %v1702_v47  ;;  %v1725_v50 = vld [vmem:[#allocation12 + $0xd20] sm:$0xff]  ;;  %v1780_v15 = vld [vmem:[#allocation12 + $0xed8] sm:$0xff] }
 0x2d4   :  { %3411 = vmatpush1.bf16.msra.mxu1 %v3410_v0  ;;  %v1704_v0 = vld [vmem:[#allocation12 + $0xc78] sm:$0xff]  ;;  %v1813_v59 = vld [vmem:[#allocation12 + $0xfe0] sm:$0xff] }
 0x2d5   :  { %3683 = vmatpush3.bf16.msra.mxu0 %v3682_v2  ;;  %3413 = vmatprep.subr.bf16.mxu1 %v3412_v3  ;;  %v1727_v2 = vld [vmem:[#allocation12 + $0xd30] sm:$0xff]  ;;  %v3700_v3 = vpack.c.bf16 %v1778_v57, %v1775_v54  ;;  %v1728_v54 = vld [vmem:[#allocation12 + $0xd38] sm:$0xff] }
 0x2d6   :  { %3685 = vmatprep.subr.bf16.mxu0 %v3684_v9  ;;  %v3430_v9 = vpack.c.bf16 %v1704_v0, %v1701_v63  ;;  %v3702_v32 = vpack.c.bf16 %v1730_v4, %v1727_v2  ;;  %v1799_v57 = vld [vmem:[#allocation12 + $0xf70] sm:$0xff]  ;;  %v1853_v0 = vld [vmem:[#allocation12 + $0x1120] sm:$0xff]  ;;  %v1856_v2 = vld [vmem:[#allocation12 + $0x1138] sm:$0xff] }
 0x2d7   :  { %v1735_v63 = vld [vmem:[#allocation12 + $0xd70] sm:$0xff] }
 0x2d8   :  { %3415 = vmatpush1.bf16.msra.mxu1 %v3414_v17  ;;  %v1736_v17 = vld [vmem:[#allocation12 + $0xd78] sm:$0xff] }
 0x2d9   :  { %3687 = vmatpush3.bf16.msra.mxu0 %v3686_v18  ;;  %3417 = vmatprep.subr.bf16.mxu1 %v3416_v19  ;;  %v1714_v18 = vld [vmem:[#allocation12 + $0xcc8] sm:$0xff]  ;;  %v1717_v19 = vld [vmem:[#allocation12 + $0xce0] sm:$0xff] }
 0x2da   :  { %3689 = vmatprep.subr.bf16.mxu0 %v3688_v23  ;;  %v3706_v23 = vpack.c.bf16 %v1736_v17, %v1733_v12  ;;  %v3436_v24 = vpack.c.bf16 %v1717_v19, %v1714_v18  ;;  %v1862_v12 = vld [vmem:[#allocation12 + $0x1168] sm:$0xff]  ;;  %v1737_v18 = vld [vmem:[#allocation12 + $0xd80] sm:$0xff]  ;;  %v1740_v19 = vld [vmem:[#allocation12 + $0xd98] sm:$0xff] }
 0x2db   :  { %v3724_v21 = vpack.c.bf16 %v1862_v12, %v1859_v11  ;;  %v1768_v12 = vld [vmem:[#allocation12 + $0xe78] sm:$0xff] }
 0x2dc   :  { %3419 = vmatpush1.bf16.msra.mxu1 %v3418_v6  ;;  %v1790_v6 = vld [vmem:[#allocation12 + $0xf28] sm:$0xff] }
 0x2dd   :  { %3691 = vmatpush3.bf16.msra.mxu0 %v3690_v27  ;;  %3421 = vmatprep.subr.bf16.mxu1 %v3420_v28  ;;  %v1720_v27 = vld [vmem:[#allocation12 + $0xcf8] sm:$0xff]  ;;  %v1723_v28 = vld [vmem:[#allocation12 + $0xd10] sm:$0xff] }
 0x2de   :  { %3693 = vmatprep.subr.bf16.mxu0 %v3692_v53  ;;  %v3710_v53 = vpack.c.bf16 %v1790_v6, %v1787_v56  ;;  %v3440_v33 = vpack.c.bf16 %v1723_v28, %v1720_v27  ;;  %v1743_v27 = vld [vmem:[#allocation12 + $0xdb0] sm:$0xff]  ;;  %v1746_v28 = vld [vmem:[#allocation12 + $0xdc8] sm:$0xff] }
 0x2df   :  { %2176 = vmatmul.mubr.f32.vlgmr.msra.gmra.mrb[4].mxu1 %v1299_v48  ;;  %v1781_v48 = vld [vmem:[#allocation12 + $0xee0] sm:$0xff] }
 0x2e0   :  { %3423 = vmatpush1.bf16.msra.mxu1 %v3422_v31  ;;  %2246 = vmatprep.mubr.f32.mxu1 %v1302_v20  ;;  %v3432_v20 = vpack.c.bf16 %v1711_v44, %v1708_v5  ;;  %v3704_v14 = vpack.c.bf16 %v1784_v8, %v1781_v48  ;;  %v1796_v31 = vld [vmem:[#allocation12 + $0xf58] sm:$0xff]  ;;  %v1731_v44 = vld [vmem:[#allocation12 + $0xd50] sm:$0xff]  ;;  %v1734_v48 = vld [vmem:[#allocation12 + $0xd68] sm:$0xff] }
 0x2e1   :  { %3695 = vmatpush3.bf16.msra.mxu0 %v3694_v34  ;;  %3425 = vmatprep.subr.bf16.mxu1 %v3424_v36  ;;  %v1726_v34 = vld [vmem:[#allocation12 + $0xd28] sm:$0xff]  ;;  %v1729_v36 = vld [vmem:[#allocation12 + $0xd40] sm:$0xff]  ;;  %v3714_v46 = vpack.c.bf16 %v1796_v31, %v1793_v49  ;;  %v3450_v13 = vpack.c.bf16 %v1734_v48, %v1731_v44 }
 0x2e2   :  { %3697 = vmatprep.subr.bf16.mxu0 %v3696_v41  ;;  %v3442_v41 = vpack.c.bf16 %v1722_v62, %v1719_v42  ;;  %v3444_v47 = vpack.c.bf16 %v1729_v36, %v1726_v34  ;;  %v1805_v8 = vld [vmem:[#allocation12 + $0xfa0] sm:$0xff]  ;;  %v1871_v62 = vld [vmem:[#allocation12 + $0x11b0] sm:$0xff]  ;;  %v1874_v49 = vld [vmem:[#allocation12 + $0x11c8] sm:$0xff] }
 0x2e3   :  { %v1753_v42 = vld [vmem:[#allocation12 + $0xe00] sm:$0xff]  ;;  %v1752_v36 = vld [vmem:[#allocation12 + $0xdf8] sm:$0xff]  ;;  %v1762_v44 = vld [vmem:[#allocation12 + $0xe48] sm:$0xff] }
 0x2e4   :  { %3427 = vmatpush1.bf16.msra.mxu1 %v3426_v58  ;;  %v3716_v58 = vpack.c.bf16 %v1850_v40, %v1847_v39  ;;  %v1749_v34 = vld [vmem:[#allocation12 + $0xde0] sm:$0xff]  ;;  %v1823_v39 = vld [vmem:[#allocation12 + $0x1030] sm:$0xff]  ;;  %v3732_v40 = vpack.c.bf16 %v1874_v49, %v1871_v62  ;;  %v1788_v62 = vld [vmem:[#allocation12 + $0xf18] sm:$0xff] }
 0x2e5   :  { %3699 = vmatpush3.bf16.msra.mxu0 %v3698_v37  ;;  %3429 = vmatprep.subr.bf16.mxu1 %v3428_v60  ;;  %v1802_v37 = vld [vmem:[#allocation12 + $0xf88] sm:$0xff]  ;;  %v1732_v60 = vld [vmem:[#allocation12 + $0xd58] sm:$0xff]  ;;  %v1765_v48 = vld [vmem:[#allocation12 + $0xe60] sm:$0xff] }
 0x2e6   :  { %3701 = vmatprep.subr.bf16.mxu0 %v3700_v3  ;;  %v3446_v3 = vpack.c.bf16 %v1728_v54, %v1725_v50  ;;  %v3718_v4 = vpack.c.bf16 %v1802_v37, %v1799_v57  ;;  %v3448_v5 = vpack.c.bf16 %v1735_v63, %v1732_v60  ;;  %v1877_v50 = vld [vmem:[#allocation12 + $0x11e0] sm:$0xff]  ;;  %v1880_v54 = vld [vmem:[#allocation12 + $0x11f8] sm:$0xff]  ;;  %v3462_v57 = vpack.c.bf16 %v1752_v36, %v1749_v34  ;;  %v1755_v60 = vld [vmem:[#allocation12 + $0xe10] sm:$0xff] }
 0x2e7   :  { %v1758_v63 = vld [vmem:[#allocation12 + $0xe28] sm:$0xff]  ;;  %v1792_v49 = vld [vmem:[#allocation12 + $0xf38] sm:$0xff]  ;;  %v1791_v34 = vld [vmem:[#allocation12 + $0xf30] sm:$0xff] }
 0x2e8   :  { %3431 = vmatpush1.bf16.msra.mxu1 %v3430_v9  ;;  %v3720_v9 = vpack.c.bf16 %v1856_v2, %v1853_v0  ;;  %v1829_v0 = vld [vmem:[#allocation12 + $0x1060] sm:$0xff]  ;;  %v3782_v2 = vld [vmem:[#allocation10 + $0x8] sm:$0xf]  ;;  %v1794_v36 = vld [vmem:[#allocation12 + $0xf48] sm:$0xff] }
 0x2e9   :  { %3703 = vmatpush3.bf16.msra.mxu0 %v3702_v32  ;;  %3433 = vmatprep.subr.bf16.mxu1 %v3432_v20  ;;  %v1808_v32 = vld [vmem:[#allocation12 + $0xfb8] sm:$0xff]  ;;  %v1738_v20 = vld [vmem:[#allocation12 + $0xd88] sm:$0xff] }
 0x2ea   :  { %3705 = vmatprep.subr.bf16.mxu0 %v3704_v14  ;;  %v3722_v14 = vpack.c.bf16 %v1808_v32, %v1805_v8  ;;  %v3452_v17 = vpack.c.bf16 %v1741_v10, %v1738_v20  ;;  %v3466_v8 = vpack.c.bf16 %v1758_v63, %v1755_v60  ;;  %v3468_v32 = vpack.c.bf16 %v1765_v48, %v1762_v44  ;;  %v1761_v20 = vld [vmem:[#allocation12 + $0xe40] sm:$0xff]  ;;  %v1764_v10 = vld [vmem:[#allocation12 + $0xe58] sm:$0xff]  ;;  %v1806_v63 = vld [vmem:[#allocation12 + $0xfa8] sm:$0xff] }
 0x2eb   :  { %v1819_v44 = vld [vmem:[#allocation12 + $0x1010] sm:$0xff] }
 0x2ec   :  { %3435 = vmatpush1.bf16.msra.mxu1 %v3434_v22  ;;  %v1814_v22 = vld [vmem:[#allocation12 + $0xfe8] sm:$0xff] }
 0x2ed   :  { %3707 = vmatpush3.bf16.msra.mxu0 %v3706_v23  ;;  %3437 = vmatprep.subr.bf16.mxu1 %v3436_v24  ;;  %v1744_v23 = vld [vmem:[#allocation12 + $0xdb8] sm:$0xff]  ;;  %v1747_v24 = vld [vmem:[#allocation12 + $0xdd0] sm:$0xff]  ;;  %v3726_v56 = vpack.c.bf16 %v1814_v22, %v1811_v1  ;;  %v1777_v22 = vld [vmem:[#allocation12 + $0xec0] sm:$0xff] }
 0x2ee   :  { %3709 = vmatprep.subr.bf16.mxu0 %v3708_v61  ;;  %v3454_v61 = vpack.c.bf16 %v1740_v19, %v1737_v18  ;;  %v3456_v6 = vpack.c.bf16 %v1747_v24, %v1744_v23  ;;  %v1767_v18 = vld [vmem:[#allocation12 + $0xe70] sm:$0xff]  ;;  %v1770_v19 = vld [vmem:[#allocation12 + $0xe88] sm:$0xff]  ;;  %v1773_v24 = vld [vmem:[#allocation12 + $0xea0] sm:$0xff] }
 0x2f0   :  { %3439 = vmatpush1.bf16.msra.mxu1 %v3438_v35  ;;  %2669 = vmatmul.mubr.f32.vlgmr.msra.gmra.mrb[20].mxu0 %v1301_v29  ;;  %v1820_v35 = vld [vmem:[#allocation12 + $0x1018] sm:$0xff] }
 0x2f1   :  { %3711 = vmatpush3.bf16.msra.mxu0 %v3710_v53  ;;  %2738 = vmatprep.mubr.f32.mxu0 %v1304_v38  ;;  %v1750_v53 = vld [vmem:[#allocation12 + $0xde8] sm:$0xff] }
 0x2f2   :  { %3441 = vmatprep.subr.bf16.mxu1 %v3440_v33  ;;  %3713 = vmatprep.subr.bf16.mxu0 %v3712_v30  ;;  %v3458_v33 = vpack.c.bf16 %v1746_v28, %v1743_v27  ;;  %v3730_v30 = vpack.c.bf16 %v1820_v35, %v1817_v7  ;;  %v3460_v31 = vpack.c.bf16 %v1753_v42, %v1750_v53  ;;  %v1779_v27 = vld [vmem:[#allocation12 + $0xed0] sm:$0xff]  ;;  %v1782_v28 = vld [vmem:[#allocation12 + $0xee8] sm:$0xff]  ;;  %v1785_v42 = vld [vmem:[#allocation12 + $0xf00] sm:$0xff] }
 0x2f3   :  { %v1786_v7 = vld [vmem:[#allocation12 + $0xf08] sm:$0xff]  ;;  %v3482_v35 = vpack.c.bf16 %v1782_v28, %v1779_v27  ;;  %v1840_v27 = vld [vmem:[#allocation12 + $0x10b8] sm:$0xff]  ;;  %v1843_v28 = vld [vmem:[#allocation12 + $0x10d0] sm:$0xff] }
 0x2f4   :  { %3443 = vmatpush1.bf16.msra.mxu1 %v3442_v41  ;;  %v1826_v41 = vld [vmem:[#allocation12 + $0x1048] sm:$0xff] }
 0x2f5   :  { %3715 = vmatpush3.bf16.msra.mxu0 %v3714_v46  ;;  %3445 = vmatprep.subr.bf16.mxu1 %v3444_v47  ;;  %v1756_v46 = vld [vmem:[#allocation12 + $0xe18] sm:$0xff]  ;;  %v1759_v47 = vld [vmem:[#allocation12 + $0xe30] sm:$0xff] }
 0x2f6   :  { %3717 = vmatprep.subr.bf16.mxu0 %v3716_v58  ;;  %v3734_v58 = vpack.c.bf16 %v1826_v41, %v1823_v39  ;;  %v3464_v37 = vpack.c.bf16 %v1759_v47, %v1756_v46  ;;  %v1798_v39 = vld [vmem:[#allocation12 + $0xf68] sm:$0xff]  ;;  %v3490_v41 = vpack.c.bf16 %v1794_v36, %v1791_v34  ;;  %v1797_v47 = vld [vmem:[#allocation12 + $0xf60] sm:$0xff]  ;;  %v1852_v34 = vld [vmem:[#allocation12 + $0x1118] sm:$0xff] }
 0x2f7   :  { %v1855_v36 = vld [vmem:[#allocation12 + $0x1130] sm:$0xff] }
 0x2f8   :  { %3447 = vmatpush1.bf16.msra.mxu1 %v3446_v3  ;;  %v1264_v3 = vrot.slane %v3782_v2, %v4208_v16 }
 0x2f9   :  { %3719 = vmatpush3.bf16.msra.mxu0 %v3718_v4  ;;  %3449 = vmatprep.subr.bf16.mxu1 %v3448_v5  ;;  %v3736_v4 = vpack.c.bf16 %v1880_v54, %v1877_v50  ;;  %v1832_v5 = vld [vmem:[#allocation12 + $0x1078] sm:$0xff] }
 0x2fa   :  { %3721 = vmatprep.subr.bf16.mxu0 %v3720_v9  ;;  %v3738_v9 = vpack.c.bf16 %v1832_v5, %v1829_v0  ;;  %v4300_v11 = vadd.f32 %v1264_v3, %v4254_v45  ;;  %v3474_v45 = vpack.c.bf16 %v1770_v19, %v1767_v18  ;;  %v1800_v50 = vld [vmem:[#allocation12 + $0xf78] sm:$0xff]  ;;  %v1810_v0 = vld [vmem:[#allocation12 + $0xfc8] sm:$0xff]  ;;  %v1809_v3 = vld [vmem:[#allocation12 + $0xfc0] sm:$0xff] }
 0x2fb   :  { %v3494_v60 = vpack.c.bf16 %v1800_v50, %v1797_v47  ;;  %v3500_v2 = vpack.c.bf16 %v1813_v59, %v1810_v0  ;;  %v1816_v5 = vld [vmem:[#allocation12 + $0xff8] sm:$0xff]  ;;  %v1831_v19 = vld [vmem:[#allocation12 + $0x1070] sm:$0xff]  ;;  %v3528_v47 = vpack.c.bf16 %v1855_v36, %v1852_v34 }
 0x2fc   :  { %3451 = vmatpush1.bf16.msra.mxu1 %v3450_v13  ;;  %v1771_v13 = vld [vmem:[#allocation12 + $0xe90] sm:$0xff]  ;;  %v1303_v1 = vmax.f32 %v4300_v11, 0.0  ;;  %v1828_v18 = vld [vmem:[#allocation12 + $0x1058] sm:$0xff] }
 0x2fd   :  { %3723 = vmatpush3.bf16.msra.mxu0 %v3722_v14  ;;  %3453 = vmatprep.subr.bf16.mxu1 %v3452_v17  ;;  %v3470_v14 = vpack.c.bf16 %v1764_v10, %v1761_v20  ;;  %v3472_v17 = vpack.c.bf16 %v1771_v13, %v1768_v12  ;;  %v1822_v20 = vld [vmem:[#allocation12 + $0x1028] sm:$0xff]  ;;  %v1825_v10 = vld [vmem:[#allocation12 + $0x1040] sm:$0xff]  ;;  %v1851_v50 = vld [vmem:[#allocation12 + $0x1110] sm:$0xff] }
 0x2fe   :  { %3725 = vmatprep.subr.bf16.mxu0 %v3724_v21  ;;  %v1774_v21 = vld [vmem:[#allocation12 + $0xea8] sm:$0xff]  ;;  %v3508_v13 = vpack.c.bf16 %v1825_v10, %v1822_v20  ;;  %v1860_v0 = vld [vmem:[#allocation12 + $0x1158] sm:$0xff] }
 0x2ff   :  { %v3476_v23 = vpack.c.bf16 %v1777_v22, %v1774_v21  ;;  %v3512_v22 = vpack.c.bf16 %v1831_v19, %v1828_v18  ;;  %v1864_v59 = vld [vmem:[#allocation12 + $0x1178] sm:$0xff]  ;;  %v1878_v18 = vld [vmem:[#allocation12 + $0x11e8] sm:$0xff] }
 0x300   :  { %3455 = vmatpush1.bf16.msra.mxu1 %v3454_v61  ;;  %v1783_v61 = vld [vmem:[#allocation12 + $0xef0] sm:$0xff]  ;;  %v1872_v20 = vld [vmem:[#allocation12 + $0x11b8] sm:$0xff] }
 0x301   :  { %3727 = vmatpush3.bf16.msra.mxu0 %v3726_v56  ;;  %3457 = vmatprep.subr.bf16.mxu1 %v3456_v6  ;;  %v3478_v56 = vpack.c.bf16 %v1776_v25, %v1773_v24  ;;  %v3480_v6 = vpack.c.bf16 %v1783_v61, %v1780_v15  ;;  %v1834_v24 = vld [vmem:[#allocation12 + $0x1088] sm:$0xff]  ;;  %v1837_v25 = vld [vmem:[#allocation12 + $0x10a0] sm:$0xff]  ;;  %v1876_v10 = vld [vmem:[#allocation12 + $0x11d8] sm:$0xff] }
 0x302   :  { %3729 = vmatprep.subr.bf16.mxu0 %v3728_v43  ;;  %v1789_v43 = vld [vmem:[#allocation12 + $0xf20] sm:$0xff]  ;;  %v3516_v61 = vpack.c.bf16 %v1837_v25, %v1834_v24 }
 0x303   :  { %v3484_v53 = vpack.c.bf16 %v1789_v43, %v1786_v7  ;;  %v3520_v43 = vpack.c.bf16 %v1843_v28, %v1840_v27 }
 0x304   :  { %3459 = vmatpush1.bf16.msra.mxu1 %v3458_v33  ;;  %v1795_v33 = vld [vmem:[#allocation12 + $0xf50] sm:$0xff] }
 0x305   :  { %3731 = vmatpush3.bf16.msra.mxu0 %v3730_v30  ;;  %3461 = vmatprep.subr.bf16.mxu1 %v3460_v31  ;;  %v3486_v30 = vpack.c.bf16 %v1788_v62, %v1785_v42  ;;  %v3488_v31 = vpack.c.bf16 %v1795_v33, %v1792_v49  ;;  %v1846_v42 = vld [vmem:[#allocation12 + $0x10e8] sm:$0xff]  ;;  %v1849_v62 = vld [vmem:[#allocation12 + $0x1100] sm:$0xff] }
 0x306   :  { %3733 = vmatprep.subr.bf16.mxu0 %v3732_v40  ;;  %v1801_v40 = vld [vmem:[#allocation12 + $0xf80] sm:$0xff]  ;;  %v3524_v33 = vpack.c.bf16 %v1849_v62, %v1846_v42 }
 0x307   :  { %v3492_v46 = vpack.c.bf16 %v1801_v40, %v1798_v39 }
 0x308   :  { %3463 = vmatpush1.bf16.msra.mxu1 %v3462_v57  ;;  %v1804_v57 = vld [vmem:[#allocation12 + $0xf98] sm:$0xff] }
 0x309   :  { %3735 = vmatpush3.bf16.msra.mxu0 %v3734_v58  ;;  %3465 = vmatprep.subr.bf16.mxu1 %v3464_v37  ;;  %v1807_v58 = vld [vmem:[#allocation12 + $0xfb0] sm:$0xff] }
 0x30a   :  { %3737 = vmatprep.subr.bf16.mxu0 %v3736_v4  ;;  %v3496_v26 = vpack.c.bf16 %v1807_v58, %v1804_v57  ;;  %v1812_v4 = vld [vmem:[#allocation12 + $0xfd8] sm:$0xff]  ;;  %v1854_v57 = vld [vmem:[#allocation12 + $0x1128] sm:$0xff] }
 0x30b   :  { %v3502_v48 = vpack.c.bf16 %v1812_v4, %v1809_v3  ;;  %v1858_v58 = vld [vmem:[#allocation12 + $0x1148] sm:$0xff]  ;;  %v1863_v4 = vld [vmem:[#allocation12 + $0x1170] sm:$0xff] }
 0x30c   :  { %3467 = vmatpush1.bf16.msra.mxu1 %v3466_v8  ;;  %v3504_v8 = vpack.c.bf16 %v1819_v44, %v1816_v5  ;;  %v1866_v5 = vld [vmem:[#allocation12 + $0x1188] sm:$0xff] }
 0x30d   :  { %3739 = vmatpush3.bf16.msra.mxu0 %v3738_v9  ;;  %3469 = vmatprep.subr.bf16.mxu1 %v3468_v32  ;;  %v1815_v9 = vld [vmem:[#allocation12 + $0xff0] sm:$0xff]  ;;  %v1818_v32 = vld [vmem:[#allocation12 + $0x1008] sm:$0xff] }
 0x30e   :  { %v3506_v12 = vpack.c.bf16 %v1818_v32, %v1815_v9  ;;  %v1870_v44 = vld [vmem:[#allocation12 + $0x11a8] sm:$0xff]  ;;  %v1869_v32 = vld [vmem:[#allocation12 + $0x11a0] sm:$0xff] }
 0x310   :  { %3471 = vmatpush1.bf16.msra.mxu1 %v3470_v14  ;;  %2739 = vmatmul.mubr.f32.vlgmr.msra.gmra.mrb[22].mxu0 %v1303_v1  ;;  %v1821_v14 = vld [vmem:[#allocation12 + $0x1020] sm:$0xff] }
 0x311   :  { %3473 = vmatprep.subr.bf16.mxu1 %v3472_v17  ;;  %v1824_v17 = vld [vmem:[#allocation12 + $0x1038] sm:$0xff] }
 0x312   :  { %v3510_v21 = vpack.c.bf16 %v1824_v17, %v1821_v14  ;;  %v1875_v17 = vld [vmem:[#allocation12 + $0x11d0] sm:$0xff] }
 0x313   :  { %v3546_v19 = vpack.c.bf16 %v1878_v18, %v1875_v17 }
 0x314   :  { %3475 = vmatpush1.bf16.msra.mxu1 %v3474_v45  ;;  %v1827_v45 = vld [vmem:[#allocation12 + $0x1050] sm:$0xff] }
 0x315   :  { %3477 = vmatprep.subr.bf16.mxu1 %v3476_v23  ;;  %v1830_v23 = vld [vmem:[#allocation12 + $0x1068] sm:$0xff] }
 0x316   :  { %v3514_v15 = vpack.c.bf16 %v1830_v23, %v1827_v45 }
 0x318   :  { %3479 = vmatpush1.bf16.msra.mxu1 %v3478_v56  ;;  %v1833_v56 = vld [vmem:[#allocation12 + $0x1080] sm:$0xff] }
 0x319   :  { %3481 = vmatprep.subr.bf16.mxu1 %v3480_v6  ;;  %v1836_v6 = vld [vmem:[#allocation12 + $0x1098] sm:$0xff] }
 0x31a   :  { %v3518_v7 = vpack.c.bf16 %v1836_v6, %v1833_v56 }
 0x31c   :  { %3483 = vmatpush1.bf16.msra.mxu1 %v3482_v35  ;;  %v1839_v35 = vld [vmem:[#allocation12 + $0x10b0] sm:$0xff] }
 0x31d   :  { %3485 = vmatprep.subr.bf16.mxu1 %v3484_v53  ;;  %v1842_v53 = vld [vmem:[#allocation12 + $0x10c8] sm:$0xff] }
 0x31e   :  { %v3522_v49 = vpack.c.bf16 %v1842_v53, %v1839_v35 }
 0x31f   :  { %2247 = vmatmul.mubr.f32.vlgmr.msra.gmra.mrb[4].mxu1 %v1301_v29  ;;  %v1803_v29 = vld [vmem:[#allocation12 + $0xf90] sm:$0xff] }
 0x320   :  { %3487 = vmatpush1.bf16.msra.mxu1 %v3486_v30  ;;  %2317 = vmatprep.mubr.f32.mxu1 %v1304_v38  ;;  %v3498_v38 = vpack.c.bf16 %v1806_v63, %v1803_v29  ;;  %v1845_v30 = vld [vmem:[#allocation12 + $0x10e0] sm:$0xff] }
 0x321   :  { %3489 = vmatprep.subr.bf16.mxu1 %v3488_v31  ;;  %v1848_v31 = vld [vmem:[#allocation12 + $0x10f8] sm:$0xff]  ;;  %v1857_v63 = vld [vmem:[#allocation12 + $0x1140] sm:$0xff] }
 0x322   :  { %v4309_v54 = vpop.f32.mrb[10].mxu0 }
 0x323   :  { %v4311_v37 = vpop.f32.mrb[11].mxu0 }
 0x324   :  { %3491 = vmatpush1.bf16.msra.mxu1 %v3490_v41  ;;  %v3526_v41 = vpack.c.bf16 %v1848_v31, %v1845_v30  ;;  %v3986_v30 = vmov 1983009808  }
 0x325   :  { %3493 = vmatprep.subr.bf16.mxu1 %v3492_v46  ;;  %v2749_v31 = vunpack.c.l.s4 %v3986_v30 }
 0x328   :  { %3495 = vmatpush1.bf16.msra.mxu1 %v3494_v60  ;;  %v1861_v60 = vld [vmem:[#allocation12 + $0x1160] sm:$0xff] }
 0x329   :  { %3497 = vmatprep.subr.bf16.mxu1 %v3496_v26  ;;  %v3530_v26 = vpack.c.bf16 %v1854_v57, %v1851_v50  ;;  %v3532_v29 = vpack.c.bf16 %v1861_v60, %v1858_v58 }
 0x32c   :  { %3499 = vmatpush1.bf16.msra.mxu1 %v3498_v38  ;;  %v1867_v38 = vld [vmem:[#allocation12 + $0x1190] sm:$0xff] }
 0x32d   :  { %3501 = vmatprep.subr.bf16.mxu1 %v3500_v2  ;;  %v3534_v2 = vpack.c.bf16 %v1860_v0, %v1857_v63  ;;  %v3536_v3 = vpack.c.bf16 %v1867_v38, %v1864_v59 }
 0x330   :  { %3503 = vmatpush1.bf16.msra.mxu1 %v3502_v48  ;;  %v1873_v48 = vld [vmem:[#allocation12 + $0x11c0] sm:$0xff] }
 0x331   :  { %3505 = vmatprep.subr.bf16.mxu1 %v3504_v8  ;;  %v3538_v8 = vpack.c.bf16 %v1866_v5, %v1863_v4  ;;  %v3540_v9 = vpack.c.bf16 %v1873_v48, %v1870_v44 }
 0x334   :  { %3507 = vmatpush1.bf16.msra.mxu1 %v3506_v12  ;;  %v1879_v12 = vld [vmem:[#allocation12 + $0x11f0] sm:$0xff] }
 0x335   :  { %3509 = vmatprep.subr.bf16.mxu1 %v3508_v13  ;;  %v3542_v13 = vpack.c.bf16 %v1872_v20, %v1869_v32  ;;  %v3544_v14 = vpack.c.bf16 %v1879_v12, %v1876_v10 }
 0x338   :  { %3511 = vmatpush1.bf16.msra.mxu1 %v3510_v21  ;;  %v1881_v21 = vld [vmem:[#allocation13] sm:$0x7] }
 0x339   :  { %3513 = vmatprep.subr.bf16.mxu1 %v3512_v22  ;;  %v1894_v22 = vrot.slane %v1881_v21, %v4208_v16  ;;  %v1886_v34 = vrot.slane %v1881_v21, %v4187_v52  ;;  %v1890_v36 = vrot.slane %v1881_v21, %v4193_v55 }
 0x33c   :  { %3515 = vmatpush1.bf16.msra.mxu1 %v3514_v15 }
 0x33d   :  { %3517 = vmatprep.subr.bf16.mxu1 %v3516_v61 }
 0x340   :  { %3519 = vmatpush1.bf16.msra.mxu1 %v3518_v7 }
 0x341   :  { %3521 = vmatprep.subr.bf16.mxu1 %v3520_v43 }
 0x343   :  { %v2825_v39 = vpop.f32.mrb[12].mxu0 }
 0x344   :  { %3523 = vmatpush1.bf16.msra.mxu1 %v3522_v49  ;;  %v2826_v40 = vpop.f32.mrb[13].mxu0 }
 0x345   :  { %v2827_v46 = vadd.f32 %v2826_v40, %v2825_v39  ;;  %3525 = vmatprep.subr.bf16.mxu1 %v3524_v33  ;;  %v2750_v39 = vunpack.c.0.s8 %v2749_v31  ;;  %v1965_v40 = vadd.f32 %v4309_v54, %v1886_v34 }
 0x347   :  { %v2391_v24 = vadd.f32 %v2827_v46, %v1894_v22  ;;  %v2753_v57 = vsub.s32 %v2750_v39, %v4184_v51 }
 0x348   :  { %3527 = vmatpush1.bf16.msra.mxu1 %v3526_v41  ;;  %v1967_v41 = vadd.f32 %v4311_v37, %v1890_v36 }
 0x349   :  { %3529 = vmatprep.subr.bf16.mxu1 %v3528_v47 }
 0x34c   :  { %3531 = vmatpush1.bf16.msra.mxu1 %v3530_v26 }
 0x34d   :  { %3533 = vmatprep.subr.bf16.mxu1 %v3532_v29 }
 0x350   :  { %3535 = vmatpush1.bf16.msra.mxu1 %v3534_v2 }
 0x351   :  { %3537 = vmatprep.subr.bf16.mxu1 %v3536_v3 }
 0x354   :  { %3539 = vmatpush1.bf16.msra.mxu1 %v3538_v8 }
 0x355   :  { %3541 = vmatprep.subr.bf16.mxu1 %v3540_v9 }
 0x358   :  { %3543 = vmatpush1.bf16.msra.mxu1 %v3542_v13 }
 0x359   :  { %3545 = vmatprep.subr.bf16.mxu1 %v3544_v14 }
 0x35c   :  { %3547 = vmatpush1.bf16.msra.mxu1 %v3546_v19 }
 0x35f   :  { %2318 = vmatmul.mubr.f32.vlgmr.msra.gmra.mrb[4].mxu1 %v1303_v1 }
 0x363   :  { %v2860_v45 = vpop.f32.mrb[14].mxu0 }
 0x364   :  { %v2861_v23 = vpop.f32.mrb[15].mxu0 }
 0x365   :  { %v2862_v25 = vadd.f32 %v2861_v23, %v2860_v45 }
 0x367   :  { %v2461_v15 = vadd.f32 %v2862_v25, %v2391_v24 }
 0x383   :  { %v2895_v61 = vpop.f32.mrb[16].mxu0 }
 0x384   :  { %v2896_v56 = vpop.f32.mrb[17].mxu0 }
 0x385   :  { %v2897_v6 = vadd.f32 %v2896_v56, %v2895_v61 }
 0x387   :  { %v2531_v27 = vadd.f32 %v2897_v6, %v2461_v15 }
 0x3a3   :  { %v2930_v28 = vpop.f32.mrb[18].mxu0 }
 0x3a4   :  { %v2931_v7 = vpop.f32.mrb[19].mxu0 }
 0x3a5   :  { %v2932_v43 = vadd.f32 %v2931_v7, %v2930_v28 }
 0x3a7   :  { %v2601_v35 = vadd.f32 %v2932_v43, %v2531_v27 }
 0x3c3   :  { %v2965_v53 = vpop.f32.mrb[20].mxu0 }
 0x3c4   :  { %v2966_v42 = vpop.f32.mrb[21].mxu0 }
 0x3c5   :  { %v2967_v11 = vadd.f32 %v2966_v42, %v2965_v53 }
 0x3c7   :  { %v2671_v1 = vadd.f32 %v2967_v11, %v2601_v35 }
 0x3e3   :  { %v3000_v62 = vpop.f32.mrb[22].mxu0 }
 0x3e4   :  { %v3001_v49 = vpop.f32.mrb[23].mxu0 }
 0x3e5   :  { %v3002_v16 = vadd.f32 %v3001_v49, %v3000_v62 }
 0x3e7   :  { %v2741_v33 = vadd.f32 %v3002_v16, %v2671_v1 }
 0x3e9   :  { %v2761_v26 = vrot.slane %v2741_v33, %v2753_v57 }
 0x432   :  { %v2319_v46 = vpop.f32.mrb[4].mxu1 }
 0x433   :  { %v3741_v47 = vadd.f32 %v2319_v46, %v1965_v40  ;;  %v2321_v50 = vpop.f32.mrb[5].mxu1 }
 0x434   :  { %v3743_v58 = vadd.f32 %v2321_v50, %v1967_v41 }
 0x436   :  { %v2747_v60 = vcombine.low %v3741_v47, %v3743_v58 }
 0x438   :  { %v2754_v29 = vrot.slane %v2747_v60, %v2753_v57 }
 0x43a   :  { %v2762_v63 = vcombine.low %v2754_v29, %v2761_v26 }
 0x43c   :  { %2764 = vst [vmem:[%s4332_s8] sm:$0x3f] %v2762_v63 }
 0x43d   :  { %2769 = vsyncpa [#allocation3], 1 }
 0x43e   :  { %2770 = vsyncpa [#allocation5], 1 }
 0x43f   :  { %2771 = vsyncpa [#allocation8], 1 }
 0x440   :  { %2772 = vsyncpa [#allocation11], 1 }
 0x441   :  { %2773 = vsyncpa [#allocation14], 1 }

</bundles_post_ra>
